<compile_context>
chip_gen: v7x
topology: tpu7x:2x2x1
jax: 0.10.0
libtpu: 0.0.40
codegen_flags: <defaults>
</compile_context>

<pallas_src>
import functools
import operator

import jax
import jax.numpy as jnp
from jax.experimental import pallas as pl
from jax.experimental.pallas import tpu as pltpu


H1 = 128   # fc1 output features
H2 = 512   # fc2 output features

_VMEM_ACT_BUDGET = 10 * 1024 * 1024  # activation working-set cap (fits v5e's 16 MiB)


def _round_up(x, m):
    return ((x + m - 1) // m) * m


def _num_tensorcores_per_chip():
    """2 TensorCores per device on v7x; 1 on v5e/v6e (safe default: 1)."""
    try:
        kind = jax.devices()[0].device_kind.lower()
    except Exception:
        return 1
    return 2 if ("v7" in kind or "7x" in kind) else 1


def _choose_tiling(batch, in_pad, out_pad, num_cores):
    """Pick (b_pad, tile_m, steps): as few grid steps as possible.

    Per-step overhead (~0.35 us) dwarfs the ~tens-of-ns of MXU work per
    128-row tile, so we want grid == num_cores unless VMEM forces more steps.
    """
    # Rough per-row VMEM bytes: bf16 z tile (double-buffered) + f32 f1/f2/f3
    # temporaries + f32 output tile (double-buffered).
    bytes_per_row = 2 * (2 * in_pad) + 4 * (H1 + H2 + out_pad) + 4 * (2 * out_pad)
    max_tile = max(8, (_VMEM_ACT_BUDGET // bytes_per_row) // 8 * 8)
    steps = max(num_cores, pl.cdiv(max(batch, 1), max_tile))
    b_pad = _round_up(max(batch, 1), 8 * steps)   # tile_m stays a multiple of 8
    return b_pad, b_pad // steps, steps


def _decoder_kernel(z_ref, w1_ref, b1_ref, w2_ref, b2_ref, w3_ref, b3_ref, o_ref):
    # fc1 + relu  (bf16 MXU operands, f32 accumulation, f32 elementwise)
    f1 = jnp.dot(z_ref[...], w1_ref[...], preferred_element_type=jnp.float32)
    f1 = jnp.maximum(f1 + b1_ref[...], 0.0)
    # fc2 + relu
    f2 = jnp.dot(f1.astype(jnp.bfloat16), w2_ref[...],
                 preferred_element_type=jnp.float32)
    f2 = jnp.maximum(f2 + b2_ref[...], 0.0)
    # fc3 + sigmoid (output_activation = torch.sigmoid)
    f3 = jnp.dot(f2.astype(jnp.bfloat16), w3_ref[...],
                 preferred_element_type=jnp.float32)
    f3 = f3 + b3_ref[...]
    # sigmoid(x) = 0.5 * tanh(0.5 * x) + 0.5  -> single EUP op + VPU fma.
    o_ref[...] = (0.5 * jnp.tanh(0.5 * f3) + 0.5).astype(o_ref.dtype)


def conv_decoder_forward(z, params, out_shape, *, out_dtype=jnp.float32):
    """Forward pass.

    params = (w1, b1, w2, b2, w3, b3) as returned by init_params(): weights are
    ALREADY padded + bf16, shaped (in_pad, 128), (128, 512), (512, out_pad);
    biases are f32 (1, padded_out_features).
    """
    w1, b1, w2, b2, w3, b3 = params
    B, in_dim = z.shape
    in_pad = w1.shape[0]
    out_pad = w3.shape[1]
    out_dim = functools.reduce(operator.mul, out_shape, 1)
    assert in_dim <= in_pad and out_dim <= out_pad

    b_pad, tile_m, steps = _choose_tiling(B, in_pad, out_pad,
                                          _num_tensorcores_per_chip())

    # Only per-call prep: pad + cast the (small) input to bf16.
    z_p = jnp.zeros((b_pad, in_pad), jnp.bfloat16)
    z_p = z_p.at[:B, :in_dim].set(z.astype(jnp.bfloat16))

    # Constant index_map => weights/biases DMA'd once, VMEM-resident across steps.
    const2d = lambda shape: pl.BlockSpec(shape, lambda i: (0, 0))

    flops = 2 * b_pad * (in_pad * H1 + H1 * H2 + H2 * out_pad)
    bytes_accessed = (
        z_p.size * 2                                   # bf16 input
        + (w1.size + w2.size + w3.size) * 2            # bf16 weights
        + (b1.size + b2.size + b3.size) * 4            # f32 biases
        + b_pad * out_pad * jnp.dtype(out_dtype).itemsize
    )
    cost = pl.CostEstimate(
        flops=flops,
        transcendentals=b_pad * out_pad,               # one tanh per output element
        bytes_accessed=bytes_accessed,
    )

    out_padded = pl.pallas_call(
        _decoder_kernel,
        out_shape=jax.ShapeDtypeStruct((b_pad, out_pad), out_dtype),
        grid=(steps,),
        in_specs=[
            pl.BlockSpec((tile_m, in_pad), lambda i: (i, 0)),   # z: tiled over batch
            const2d((in_pad, H1)),                              # w1
            const2d((1, H1)),                                   # b1
            const2d((H1, H2)),                                  # w2
            const2d((1, H2)),                                   # b2
            const2d((H2, out_pad)),                             # w3
            const2d((1, out_pad)),                              # b3
        ],
        out_specs=pl.BlockSpec((tile_m, out_pad), lambda i: (i, 0)),
        compiler_params=pltpu.CompilerParams(
            dimension_semantics=("parallel",),   # shards the 2-step grid across v7x's TCs
        ),
        cost_estimate=cost,
    )(z_p, w1, b1, w2, b2, w3, b3)

    # Drop padding, then out.view((B,) + out_shape).
    out_flat = out_padded[:B, :out_dim]
    return out_flat.reshape((B,) + tuple(out_shape))


def init_params(key, in_dim, out_dim):
    """nn.Linear-style U(-1/sqrt(fan_in), 1/sqrt(fan_in)) init.

    Padding and bf16 casting happen HERE, once, so the forward wrapper emits no
    per-call pad/copy ops:
      w1: (round_up(in_dim,128), 128) bf16      b1: (1, 128)  f32
      w2: (128, 512)              bf16          b2: (1, 512)  f32
      w3: (512, round_up(out_dim,128)) bf16     b3: (1, round_up(out_dim,128)) f32
    Padded rows/cols are zero, so they contribute nothing to the real outputs.
    """
    in_pad = _round_up(in_dim, 128)
    out_pad = _round_up(out_dim, 128)
    ks = jax.random.split(key, 6)

    def linear(kw, kb, fan_in, fan_out, pad_in, pad_out):
        bound = 1.0 / (fan_in ** 0.5)
        w = jax.random.uniform(kw, (fan_in, fan_out), jnp.float32, -bound, bound)
        b = jax.random.uniform(kb, (1, fan_out), jnp.float32, -bound, bound)
        w_p = jnp.zeros((pad_in, pad_out), jnp.bfloat16)
        w_p = w_p.at[:fan_in, :fan_out].set(w.astype(jnp.bfloat16))
        b_p = jnp.zeros((1, pad_out), jnp.float32).at[:, :fan_out].set(b)
        return w_p, b_p

    w1, b1 = linear(ks[0], ks[1], in_dim, H1, in_pad, H1)
    w2, b2 = linear(ks[2], ks[3], H1, H2, H1, H2)
    w3, b3 = linear(ks[4], ks[5], H2, out_dim, H2, out_pad)
    return (w1, b1, w2, b2, w3, b3)


def _reference_forward(z, params, out_shape):
    """Pure-JAX reference using the same bf16-operand / f32-accumulate math."""
    w1, b1, w2, b2, w3, b3 = params
    in_dim = z.shape[1]
    out_dim = functools.reduce(operator.mul, out_shape, 1)

    def mm(x, w):
        return jnp.dot(x.astype(jnp.bfloat16), w,
                       preferred_element_type=jnp.float32)

    f1 = jnp.maximum(mm(z, w1[:in_dim]) + b1, 0.0)
    f2 = jnp.maximum(mm(f1, w2) + b2, 0.0)
    f3 = mm(f2, w3[:, :out_dim]) + b3[:, :out_dim]
    out = jax.nn.sigmoid(f3)
    return out.reshape((z.shape[0],) + tuple(out_shape))


if __name__ == "__main__":
    key = jax.random.PRNGKey(0)
    k_z, k_p = jax.random.split(key)

    in_dim = 20                 # ConvDecoder default in_dim=20
    out_shape = (1, 8, 16)      # out_dim = 128 (lane-aligned)
    out_dim = functools.reduce(operator.mul, out_shape, 1)
    batch = 200                 # grid = 1 step (v5e/v6e) or 2 steps (v7x)

    z = jax.random.normal(k_z, (batch, in_dim), jnp.float32)
    params = init_params(k_p, in_dim, out_dim)

    out = conv_decoder_forward(z, params, out_shape)
    out = jax.block_until_ready(out)

    ref = _reference_forward(z, params, out_shape)
    assert out.shape == (batch,) + out_shape, out.shape
    # bf16 matmul operands -> compare with a moderate tolerance.
    assert jnp.allclose(out, ref, atol=1e-2, rtol=1e-2), "mismatch vs reference"

    print("KERNEL_OK")
</pallas_src>

<mosaic_0001>
module attributes {stable_mosaic.version = 11 : i64} {
  func.func @_decoder_kernel(%arg0: i32, %arg1: memref<200x128xbf16, #tpu.memory_space<vmem>>, %arg2: memref<128x128xbf16, #tpu.memory_space<vmem>>, %arg3: memref<1x128xf32, #tpu.memory_space<vmem>>, %arg4: memref<128x512xbf16, #tpu.memory_space<vmem>>, %arg5: memref<1x512xf32, #tpu.memory_space<vmem>>, %arg6: memref<512x128xbf16, #tpu.memory_space<vmem>>, %arg7: memref<1x128xf32, #tpu.memory_space<vmem>>, %arg8: memref<200x128xf32, #tpu.memory_space<vmem>>) attributes {dimension_semantics = [#tpu.dimension_semantics<parallel>], iteration_bounds = array<i64: 1>, scalar_prefetch = 0 : i64, scratch_operands = 0 : i64, tpu.core_type = #tpu.core_type<tc>, window_params = [{transform_indices = @transform_0, window_bounds = array<i64: 200, 128>}, {pipeline_mode = #tpu.pipeline_mode<synchronous>, transform_indices = @transform_1, window_bounds = array<i64: 128, 128>}, {pipeline_mode = #tpu.pipeline_mode<synchronous>, transform_indices = @transform_2, window_bounds = array<i64: 1, 128>}, {pipeline_mode = #tpu.pipeline_mode<synchronous>, transform_indices = @transform_3, window_bounds = array<i64: 128, 512>}, {pipeline_mode = #tpu.pipeline_mode<synchronous>, transform_indices = @transform_4, window_bounds = array<i64: 1, 512>}, {pipeline_mode = #tpu.pipeline_mode<synchronous>, transform_indices = @transform_5, window_bounds = array<i64: 512, 128>}, {pipeline_mode = #tpu.pipeline_mode<synchronous>, transform_indices = @transform_6, window_bounds = array<i64: 1, 128>}, {transform_indices = @transform_7, window_bounds = array<i64: 200, 128>}]} {
    %c0 = arith.constant 0 : index
    %c0_0 = arith.constant 0 : index
    %0 = vector.load %arg1[%c0, %c0_0] : memref<200x128xbf16, #tpu.memory_space<vmem>>, vector<200x128xbf16>
    %c0_1 = arith.constant 0 : index
    %c0_2 = arith.constant 0 : index
    %1 = vector.load %arg2[%c0_1, %c0_2] : memref<128x128xbf16, #tpu.memory_space<vmem>>, vector<128x128xbf16>
    %cst = arith.constant dense<0.000000e+00> : vector<200x128xf32>
    %2 = tpu.matmul %0, %1, %cst {dimension_numbers = #tpu.dot_dimension_numbers<[1], [0], [0], [1], [0, 0, 1, 1], [], []>} : vector<200x128xbf16>, vector<128x128xbf16>, vector<200x128xf32> -> vector<200x128xf32>
    %c0_3 = arith.constant 0 : index
    %c0_4 = arith.constant 0 : index
    %3 = vector.load %arg3[%c0_3, %c0_4] : memref<1x128xf32, #tpu.memory_space<vmem>>, vector<1x128xf32>
    %4 = vector.broadcast %3 : vector<1x128xf32> to vector<200x128xf32>
    %5 = arith.addf %2, %4 : vector<200x128xf32>
    %cst_5 = arith.constant 0.000000e+00 : f32
    %6 = vector.broadcast %cst_5 : f32 to vector<200x128xf32>
    %7 = arith.maximumf %5, %6 : vector<200x128xf32>
    %8 = arith.truncf %7 : vector<200x128xf32> to vector<200x128xbf16>
    %c0_6 = arith.constant 0 : index
    %c0_7 = arith.constant 0 : index
    %9 = vector.load %arg4[%c0_6, %c0_7] : memref<128x512xbf16, #tpu.memory_space<vmem>>, vector<128x512xbf16>
    %cst_8 = arith.constant dense<0.000000e+00> : vector<200x512xf32>
    %10 = tpu.matmul %8, %9, %cst_8 {dimension_numbers = #tpu.dot_dimension_numbers<[1], [0], [0], [1], [0, 0, 1, 1], [], []>} : vector<200x128xbf16>, vector<128x512xbf16>, vector<200x512xf32> -> vector<200x512xf32>
    %c0_9 = arith.constant 0 : index
    %c0_10 = arith.constant 0 : index
    %11 = vector.load %arg5[%c0_9, %c0_10] : memref<1x512xf32, #tpu.memory_space<vmem>>, vector<1x512xf32>
    %12 = vector.broadcast %11 : vector<1x512xf32> to vector<200x512xf32>
    %13 = arith.addf %10, %12 : vector<200x512xf32>
    %cst_11 = arith.constant 0.000000e+00 : f32
    %14 = vector.broadcast %cst_11 : f32 to vector<200x512xf32>
    %15 = arith.maximumf %13, %14 : vector<200x512xf32>
    %16 = arith.truncf %15 : vector<200x512xf32> to vector<200x512xbf16>
    %c0_12 = arith.constant 0 : index
    %c0_13 = arith.constant 0 : index
    %17 = vector.load %arg6[%c0_12, %c0_13] : memref<512x128xbf16, #tpu.memory_space<vmem>>, vector<512x128xbf16>
    %cst_14 = arith.constant dense<0.000000e+00> : vector<200x128xf32>
    %18 = tpu.matmul %16, %17, %cst_14 {dimension_numbers = #tpu.dot_dimension_numbers<[1], [0], [0], [1], [0, 0, 1, 1], [], []>} : vector<200x512xbf16>, vector<512x128xbf16>, vector<200x128xf32> -> vector<200x128xf32>
    %c0_15 = arith.constant 0 : index
    %c0_16 = arith.constant 0 : index
    %19 = vector.load %arg7[%c0_15, %c0_16] : memref<1x128xf32, #tpu.memory_space<vmem>>, vector<1x128xf32>
    %20 = vector.broadcast %19 : vector<1x128xf32> to vector<200x128xf32>
    %21 = arith.addf %18, %20 : vector<200x128xf32>
    %cst_17 = arith.constant 5.000000e-01 : f32
    %22 = vector.broadcast %cst_17 : f32 to vector<200x128xf32>
    %23 = arith.mulf %22, %21 : vector<200x128xf32>
    %24 = math.tanh %23 : vector<200x128xf32>
    %cst_18 = arith.constant 5.000000e-01 : f32
    %25 = vector.broadcast %cst_18 : f32 to vector<200x128xf32>
    %26 = arith.mulf %25, %24 : vector<200x128xf32>
    %cst_19 = arith.constant 5.000000e-01 : f32
    %27 = vector.broadcast %cst_19 : f32 to vector<200x128xf32>
    %28 = arith.addf %26, %27 : vector<200x128xf32>
    %c0_20 = arith.constant 0 : index
    %c0_21 = arith.constant 0 : index
    %29 = vector.load %arg8[%c0_20, %c0_21] : memref<200x128xf32, #tpu.memory_space<vmem>>, vector<200x128xf32>
    tpu.vector_store %arg8[%c0_20, %c0_21], %28 {strides = array<i32>} : memref<200x128xf32, #tpu.memory_space<vmem>>, vector<200x128xf32>,
    return
  }
  func.func @transform_0(%arg0: i32) -> (i32, i32) {
    %c0_i32 = arith.constant 0 : i32
    %c0_i32_0 = arith.constant 0 : i32
    return %arg0, %c0_i32 : i32, i32
  }
  func.func @transform_1(%arg0: i32) -> (i32, i32) {
    %c0_i32 = arith.constant 0 : i32
    %c0_i32_0 = arith.constant 0 : i32
    %c0_i32_1 = arith.constant 0 : i32
    return %c0_i32, %c0_i32_0 : i32, i32
  }
  func.func @transform_2(%arg0: i32) -> (i32, i32) {
    %c0_i32 = arith.constant 0 : i32
    %c0_i32_0 = arith.constant 0 : i32
    %c0_i32_1 = arith.constant 0 : i32
    return %c0_i32, %c0_i32_0 : i32, i32
  }
  func.func @transform_3(%arg0: i32) -> (i32, i32) {
    %c0_i32 = arith.constant 0 : i32
    %c0_i32_0 = arith.constant 0 : i32
    %c0_i32_1 = arith.constant 0 : i32
    return %c0_i32, %c0_i32_0 : i32, i32
  }
  func.func @transform_4(%arg0: i32) -> (i32, i32) {
    %c0_i32 = arith.constant 0 : i32
    %c0_i32_0 = arith.constant 0 : i32
    %c0_i32_1 = arith.constant 0 : i32
    return %c0_i32, %c0_i32_0 : i32, i32
  }
  func.func @transform_5(%arg0: i32) -> (i32, i32) {
    %c0_i32 = arith.constant 0 : i32
    %c0_i32_0 = arith.constant 0 : i32
    %c0_i32_1 = arith.constant 0 : i32
    return %c0_i32, %c0_i32_0 : i32, i32
  }
  func.func @transform_6(%arg0: i32) -> (i32, i32) {
    %c0_i32 = arith.constant 0 : i32
    %c0_i32_0 = arith.constant 0 : i32
    %c0_i32_1 = arith.constant 0 : i32
    return %c0_i32, %c0_i32_0 : i32, i32
  }
  func.func @transform_7(%arg0: i32) -> (i32, i32) {
    %c0_i32 = arith.constant 0 : i32
    %c0_i32_0 = arith.constant 0 : i32
    return %arg0, %c0_i32 : i32, i32
  }
}

</mosaic_0001>

<bundles_post_ra>
// kernel: tpu_custom_call.1
= control target key start
LH: loop header
LB: loop body
LE: loop exit
PB: predicated region body
PF: predicated region fallthrough
CT: control target
= control target key end

     0   :  { %12 = vsyncpa [#allocation3], 0  ;;  %s2844_s0 = inlined_call_operand.hbm [shape: bf16[200,128], index: 0, kind: input, shape index: {}]   ;;  %s2845_s1 = inlined_call_operand.hbm [shape: bf16[128,128], index: 1, kind: input, shape index: {}]   ;;  %s2846_s2 = inlined_call_operand.vmem [shape: f32[1,128], index: 2, kind: input, shape index: {}]   ;;  %s2847_s3 = inlined_call_operand.hbm [shape: bf16[128,512], index: 3, kind: input, shape index: {}]   ;;  %s2848_s4 = inlined_call_operand.vmem [shape: f32[1,512], index: 4, kind: input, shape index: {}]   ;;  %s2849_s5 = inlined_call_operand.hbm [shape: bf16[512,128], index: 5, kind: input, shape index: {}]   ;;  %s2850_s6 = inlined_call_operand.vmem [shape: f32[1,128], index: 6, kind: input, shape index: {}]   ;;  %s2851_s7 = inlined_call_operand.hbm [shape: f32[200,128], index: 7, kind: output, shape index: {}]  }
   0x1   :  { %13 = vsyncpa [#allocation6], 0 }
   0x2   :  { %14 = vsyncpa [#allocation9], 0 }
   0x3   :  { %15 = vsyncpa [#allocation4], 0  ;;  %s2459_s24 = smov [#allocation5]   ;;  %s2460_s26 = smov [#allocation2]  }
   0x4   :  { %s33_s25 = sshll.u32 %s2459_s24, 4  ;;  %s21_s27 = sshll.u32 %s2460_s26, 4  ;;  %s34_s25 = int_to_ptr.vmem [resolvable:$true] %s33_s25  ;;  %s2513_s27 = int_to_ptr.vmem [resolvable:$true] %s21_s27 }
   0x5   :  { %s2341_s30 = scalar_lea.hbm %s2845_s1, 1024 }
   0x6   :  { %p2342_p0 = scmp.ne.s32.totalorder %s2845_s1, %s2341_s30  ;;  %p2345_p1 = scmp.lt.u32.totalorder %s2341_s30, %s2845_s1 }
   0x8   :  { %p2347_p2 = pnand %p2345_p1, %p2342_p0 }
   0xa   :  { %2350 = shalt.err (!%p2347_p2)
}
   0xb   :  { %s2351_s12 = scalar_lea.vmem %s34_s25, 1024  ;;  %p2356_p4 = scmp.lt.s32.totalorder %s34_s25, %s34_s25 }
   0xc   :  { %p2352_p3 = scmp.ne.s32.totalorder %s34_s25, %s2351_s12  ;;  %p2357_p5 = scmp.lt.s32.totalorder %s2351_s12, %s2351_s12 }
   0xe   :  { %p2358_p6 = por %p2357_p5, %p2356_p4 }
  0x10   :  { %p2359_p7 = pnand %p2358_p6, %p2352_p3 }
  0x12   :  { %2362 = shalt.err (!%p2359_p7)
}
  0x13   :  { %s2461_s13 = smov 64   ;;  %s2462_s14 = smov 4  }
  0x14   :  { %39 = dma.hbm_to_vmem [thread:$0]  %s2845_s1, 1024, %s34_s25, [#allocation6], %s2461_s13, %s2461_s13, %s2462_s14  }
  0x15   :  { %s2363_s19 = scalar_lea.hbm %s2844_s0, 1600 }
  0x16   :  { %p2364_p8 = scmp.ne.s32.totalorder %s2844_s0, %s2363_s19  ;;  %p2367_p9 = scmp.lt.u32.totalorder %s2363_s19, %s2844_s0 }
  0x18   :  { %p2369_p10 = pnand %p2367_p9, %p2364_p8 }
  0x1a   :  { %2372 = shalt.err (!%p2369_p10)
}
  0x1b   :  { %s2373_s24 = scalar_lea.vmem %s2513_s27, 1600  ;;  %p2378_p12 = scmp.lt.s32.totalorder %s2513_s27, %s2513_s27 }
  0x1c   :  { %p2374_p11 = scmp.ne.s32.totalorder %s2513_s27, %s2373_s24  ;;  %p2379_p13 = scmp.lt.s32.totalorder %s2373_s24, %s2373_s24 }
  0x1e   :  { %p2380_p0 = por %p2379_p13, %p2378_p12 }
  0x20   :  { %p2381_p1 = pnand %p2380_p0, %p2374_p11 }
  0x22   :  { %2384 = shalt.err (!%p2381_p1)
}
  0x23   :  { %27 = dma.hbm_to_vmem [thread:$0]  %s2844_s0, 1600, %s2513_s27, [#allocation3], %s2461_s13, %s2461_s13, %s2462_s14  }
  0x24   :  { %s2463_s26 = smov [#allocation7]   ;;  %s2385_s8 = scalar_lea.hbm %s2847_s3, 4096 }
  0x25   :  { %s47_s28 = sshll.u32 %s2463_s26, 4  ;;  %p2386_p2 = scmp.ne.s32.totalorder %s2847_s3, %s2385_s8  ;;  %s48_s28 = int_to_ptr.vmem [resolvable:$true] %s47_s28 }
  0x26   :  { %p2389_p3 = scmp.lt.u32.totalorder %s2385_s8, %s2847_s3 }
  0x28   :  { %p2391_p4 = pnand %p2389_p3, %p2386_p2 }
  0x2a   :  { %2394 = shalt.err (!%p2391_p4)
}
  0x2b   :  { %s2395_s15 = scalar_lea.vmem %s48_s28, 4096  ;;  %p2400_p6 = scmp.lt.s32.totalorder %s48_s28, %s48_s28 }
  0x2c   :  { %p2396_p5 = scmp.ne.s32.totalorder %s48_s28, %s2395_s15  ;;  %p2401_p7 = scmp.lt.s32.totalorder %s2395_s15, %s2395_s15 }
  0x2e   :  { %p2402_p8 = por %p2401_p7, %p2400_p6 }
  0x30   :  { %p2403_p9 = pnand %p2402_p8, %p2396_p5 }
  0x32   :  { %2406 = shalt.err (!%p2403_p9)
}
  0x33   :  { %s2464_s0 = smov 256   ;;  %s2465_s27 = smov 16  }
  0x34   :  { %53 = dma.hbm_to_vmem [thread:$0]  %s2847_s3, 4096, %s48_s28, [#allocation6], %s2464_s0, %s2464_s0, %s2465_s27  }
  0x35   :  { %s2466_s18 = smov [#allocation8]   ;;  %s2407_s22 = scalar_lea.hbm %s2849_s5, 4096 }
  0x36   :  { %s61_s19 = sshll.u32 %s2466_s18, 4  ;;  %p2408_p10 = scmp.ne.s32.totalorder %s2849_s5, %s2407_s22  ;;  %s62_s19 = int_to_ptr.vmem [resolvable:$true] %s61_s19 }
  0x37   :  { %p2411_p11 = scmp.lt.u32.totalorder %s2407_s22, %s2849_s5 }
  0x39   :  { %p2413_p12 = pnand %p2411_p11, %p2408_p10 }
  0x3b   :  { %2416 = shalt.err (!%p2413_p12)
}
  0x3c   :  { %s2417_s26 = scalar_lea.vmem %s62_s19, 4096  ;;  %p2422_p0 = scmp.lt.s32.totalorder %s62_s19, %s62_s19 }
  0x3d   :  { %p2418_p13 = scmp.ne.s32.totalorder %s62_s19, %s2417_s26  ;;  %p2423_p1 = scmp.lt.s32.totalorder %s2417_s26, %s2417_s26 }
  0x3f   :  { %p2424_p2 = por %p2423_p1, %p2422_p0 }
  0x41   :  { %p2425_p3 = pnand %p2424_p2, %p2418_p13 }
  0x43   :  { %2428 = shalt.err (!%p2425_p3)
}
  0x44   :  { %67 = dma.hbm_to_vmem [thread:$0]  %s2849_s5, 4096, %s62_s19, [#allocation9], %s2461_s13, %s2461_s13, %s2462_s14  }
  0x45   :  { %2451 = dma.done.wait [#allocation3], 1600  }
  0x46   :  { %2452 = vsyncadd [#allocation3], 4294965696 }
  0x47   :  { %2453 = dma.done.wait [#allocation6], 5120  }
  0x48   :  { %2454 = vsyncadd [#allocation6], 4294962176 }
  0x49   :  { %2455 = dma.done.wait [#allocation9], 4096  }
  0x4a   :  { %2456 = vsyncadd [#allocation9], 4294963200  ;;  %v2467_v0 = vmov 0.0   ;;  %vm2468_vm0 = vmmov 0   ;;  %v2190_v1 = vld [vmem:[#allocation5] sm:$0xff]   ;;  %v2191_v2 = vld [vmem:[#allocation5 + $0x8] sm:$0xff]  }
  0x4b   :  { %2092 = vmatprep.subr.bf16.mxu0 %v2467_v0  ;;  %2108 = vmatprep.mubr.msk.bf16.mxu0 %vm2468_vm0, %v2467_v0  ;;  %v2192_v3 = vld [vmem:[#allocation5 + $0x10] sm:$0xff]   ;;  %v2193_v4 = vld [vmem:[#allocation5 + $0x18] sm:$0xff]   ;;  %v2194_v5 = vld [vmem:[#allocation5 + $0x20] sm:$0xff]   ;;  %v2469_v54 = vmov 0  }
  0x4c   :  { %2160 = vmatprep.subr.bf16.mxu1 %v2467_v0  ;;  %2136 = vmatprep.mubr.msk.bf16.mxu1 %vm2468_vm0, %v2467_v0  ;;  %v2195_v6 = vld [vmem:[#allocation5 + $0x28] sm:$0xff]   ;;  %v2196_v7 = vld [vmem:[#allocation5 + $0x30] sm:$0xff]   ;;  %v2197_v8 = vld [vmem:[#allocation5 + $0x38] sm:$0xff]  }
  0x4d   :  { %2093 = vmatpush3.bf16.msra.mxu0 %v2190_v1  ;;  %2168 = vmatpush3.bf16.msra.mxu1 %v2190_v1  ;;  %v2213_v9 = vld [vmem:[#allocation7 + $0xc] ss:$16 sps:$4 sm:$0xff]   ;;  %v2216_v10 = vld [vmem:[#allocation7 + $0x4] ss:$16 sps:$4 sm:$0xff]   ;;  %v2211_v13 = vld [vmem:[#allocation7 + $0x8] ss:$16 sps:$4 sm:$0xff]  }
  0x4e   :  { %2094 = vmatprep.subr.bf16.mxu0 %v2467_v0  ;;  %2161 = vmatprep.subr.bf16.mxu1 %v2467_v0  ;;  %v2198_v11 = vld [vmem:[#allocation2] sm:$0xff]   ;;  %v2205_v12 = vld [vmem:[#allocation2 + $0x38] sm:$0xff]   ;;  %v2199_v18 = vld [vmem:[#allocation2 + $0x8] sm:$0xff]  }
  0x4f   :  { %v2214_v14 = vld [vmem:[#allocation7] ss:$16 sps:$4 sm:$0xff]   ;;  %v2219_v15 = vld [vmem:[#allocation7 + $0x2c] ss:$16 sps:$4 sm:$0xff]   ;;  %v2222_v16 = vld [vmem:[#allocation7 + $0x24] ss:$16 sps:$4 sm:$0xff]  }
  0x50   :  { %v2217_v17 = vld [vmem:[#allocation7 + $0x28] ss:$16 sps:$4 sm:$0xff]   ;;  %v2220_v19 = vld [vmem:[#allocation7 + $0x20] ss:$16 sps:$4 sm:$0xff]   ;;  %v2225_v20 = vld [vmem:[#allocation7 + $0x4c] ss:$16 sps:$4 sm:$0xff]  }
  0x51   :  { %2095 = vmatpush3.bf16.msra.mxu0 %v2191_v2  ;;  %2169 = vmatpush3.bf16.msra.mxu1 %v2191_v2  ;;  %v2228_v21 = vld [vmem:[#allocation7 + $0x44] ss:$16 sps:$4 sm:$0xff]   ;;  %v2206_v22 = vld [vmem:[#allocation2 + $0x40] sm:$0xff]   ;;  %v2223_v23 = vld [vmem:[#allocation7 + $0x48] ss:$16 sps:$4 sm:$0xff]  }
  0x52   :  { %2096 = vmatprep.subr.bf16.mxu0 %v2467_v0  ;;  %2162 = vmatprep.subr.bf16.mxu1 %v2467_v0  ;;  %v2226_v24 = vld [vmem:[#allocation7 + $0x40] ss:$16 sps:$4 sm:$0xff]   ;;  %v2231_v25 = vld [vmem:[#allocation7 + $0x6c] ss:$16 sps:$4 sm:$0xff]   ;;  %v2234_v26 = vld [vmem:[#allocation7 + $0x64] ss:$16 sps:$4 sm:$0xff]  }
  0x53   :  { %v2229_v27 = vld [vmem:[#allocation7 + $0x68] ss:$16 sps:$4 sm:$0xff]   ;;  %v2232_v28 = vld [vmem:[#allocation7 + $0x60] ss:$16 sps:$4 sm:$0xff]   ;;  %v2237_v29 = vld [vmem:[#allocation7 + $0x8c] ss:$16 sps:$4 sm:$0xff]  }
  0x54   :  { %v2240_v30 = vld [vmem:[#allocation7 + $0x84] ss:$16 sps:$4 sm:$0xff]   ;;  %v2200_v31 = vld [vmem:[#allocation2 + $0x10] sm:$0xff]   ;;  %v2235_v33 = vld [vmem:[#allocation7 + $0x88] ss:$16 sps:$4 sm:$0xff]  }
  0x55   :  { %2097 = vmatpush3.bf16.msra.mxu0 %v2192_v3  ;;  %2170 = vmatpush3.bf16.msra.mxu1 %v2192_v3  ;;  %v2207_v32 = vld [vmem:[#allocation2 + $0x48] sm:$0xff]   ;;  %v2238_v34 = vld [vmem:[#allocation7 + $0x80] ss:$16 sps:$4 sm:$0xff]   ;;  %v2243_v35 = vld [vmem:[#allocation7 + $0xac] ss:$16 sps:$4 sm:$0xff]  }
  0x56   :  { %2098 = vmatprep.subr.bf16.mxu0 %v2467_v0  ;;  %2163 = vmatprep.subr.bf16.mxu1 %v2467_v0  ;;  %v2246_v36 = vld [vmem:[#allocation7 + $0xa4] ss:$16 sps:$4 sm:$0xff]   ;;  %v2241_v37 = vld [vmem:[#allocation7 + $0xa8] ss:$16 sps:$4 sm:$0xff]   ;;  %v2244_v38 = vld [vmem:[#allocation7 + $0xa0] ss:$16 sps:$4 sm:$0xff]  }
  0x57   :  { %v2249_v39 = vld [vmem:[#allocation7 + $0xc4] ss:$16 sps:$4 sm:$0xff]   ;;  %v2252_v40 = vld [vmem:[#allocation7 + $0xcc] ss:$16 sps:$4 sm:$0xff]   ;;  %v2247_v43 = vld [vmem:[#allocation7 + $0xc0] ss:$16 sps:$4 sm:$0xff]  }
  0x58   :  { %v2201_v41 = vld [vmem:[#allocation2 + $0x18] sm:$0xff]   ;;  %v2208_v42 = vld [vmem:[#allocation2 + $0x50] sm:$0xff]   ;;  %v2202_v45 = vld [vmem:[#allocation2 + $0x20] sm:$0xff]  }
  0x59   :  { %2099 = vmatpush3.bf16.msra.mxu0 %v2193_v4  ;;  %2171 = vmatpush3.bf16.msra.mxu1 %v2193_v4  ;;  %v2250_v44 = vld [vmem:[#allocation7 + $0xc8] ss:$16 sps:$4 sm:$0xff]   ;;  %v2210_v48 = vld [vmem:[#allocation2 + $0x60] ss:$0 sps:$4 sm:$0xff]   ;;  %v2204_v49 = vld [vmem:[#allocation2 + $0x30] sm:$0xff]  }
  0x5a   :  { %2100 = vmatprep.subr.bf16.mxu0 %v2467_v0  ;;  %2164 = vmatprep.subr.bf16.mxu1 %v2467_v0  ;;  %v2209_v46 = vld [vmem:[#allocation2 + $0x58] sm:$0xff]   ;;  %v2203_v47 = vld [vmem:[#allocation2 + $0x28] sm:$0xff]   ;;  %v2258_v51 = vld [vmem:[#allocation7 + $0xec] ss:$16 sps:$4 sm:$0xff]  }
  0x5b   :  { %v2255_v50 = vld [vmem:[#allocation7 + $0xe4] ss:$16 sps:$4 sm:$0xff]   ;;  %v2253_v52 = vld [vmem:[#allocation7 + $0xe0] ss:$16 sps:$4 sm:$0xff]   ;;  %v2256_v53 = vld [vmem:[#allocation7 + $0xe8] ss:$16 sps:$4 sm:$0xff]  }
  0x5c   :  { %v2259_v55 = vld [vmem:[#allocation8 + $0x40] sm:$0xff]   ;;  %v2624_v57 = vld [vmem:[%s2846_s2] ss:$0 sm:$0xff] }
  0x5d   :  { %2101 = vmatpush3.bf16.msra.mxu0 %v2194_v5  ;;  %2172 = vmatpush3.bf16.msra.mxu1 %v2194_v5  ;;  %v2261_v56 = vld [vmem:[#allocation8 + $0xc0] sm:$0xff]  }
  0x5e   :  { %2102 = vmatprep.subr.bf16.mxu0 %v2467_v0  ;;  %2165 = vmatprep.subr.bf16.mxu1 %v2467_v0 }
  0x61   :  { %2103 = vmatpush3.bf16.msra.mxu0 %v2195_v6  ;;  %2173 = vmatpush3.bf16.msra.mxu1 %v2195_v6 }
  0x62   :  { %2104 = vmatprep.subr.bf16.mxu0 %v2467_v0  ;;  %2166 = vmatprep.subr.bf16.mxu1 %v2467_v0 }
  0x65   :  { %2105 = vmatpush3.bf16.msra.mxu0 %v2196_v7  ;;  %2174 = vmatpush3.bf16.msra.mxu1 %v2196_v7 }
  0x66   :  { %2106 = vmatprep.subr.bf16.mxu0 %v2467_v0  ;;  %2167 = vmatprep.subr.bf16.mxu1 %v2467_v0 }
  0x69   :  { %2107 = vmatpush3.bf16.msra.mxu0 %v2197_v8  ;;  %2175 = vmatpush3.bf16.msra.mxu1 %v2197_v8 }
  0x6a   :  { %804 = vmatprep.subr.bf16.mxu0 %v2213_v9  ;;  %643 = vmatprep.subr.bf16.mxu1 %v2216_v10 }
  0x6c   :  { %2109 = vmatmul.mubr.bf16.vlgmr.msra.gmra.mrb[0].mxu0 %v2198_v11  ;;  %2137 = vmatmul.mubr.bf16.vlgmr.msra.gmra.mrb[0].mxu1 %v2205_v12  ;;  %v2260_v12 = vld [vmem:[#allocation8] sm:$0xff]  }
  0x6d   :  { %2112 = vmatprep.mubr.msk.bf16.mxu0 %vm2468_vm0, %v2467_v0  ;;  %2140 = vmatprep.mubr.msk.bf16.mxu1 %vm2468_vm0, %v2467_v0 }
  0x6e   :  { %805 = vmatpush1.bf16.msra.mxu0 %v2211_v13  ;;  %644 = vmatpush1.bf16.msra.mxu1 %v2214_v14  ;;  %v2262_v13 = vld [vmem:[#allocation8 + $0x80] sm:$0xff]  }
  0x6f   :  { %806 = vmatprep.subr.bf16.mxu0 %v2219_v15  ;;  %645 = vmatprep.subr.bf16.mxu1 %v2222_v16  ;;  %v2263_v16 = vld [vmem:[#allocation8 + $0x48] sm:$0xff]  }
  0x72   :  { %807 = vmatpush1.bf16.msra.mxu0 %v2217_v17  ;;  %646 = vmatpush1.bf16.msra.mxu1 %v2220_v19  ;;  %v2265_v17 = vld [vmem:[#allocation8 + $0xc8] sm:$0xff]  }
  0x73   :  { %808 = vmatprep.subr.bf16.mxu0 %v2225_v20  ;;  %647 = vmatprep.subr.bf16.mxu1 %v2228_v21 }
  0x74   :  { %2113 = vmatmul.mubr.bf16.gmra.mrb[4].mxu0 %v2199_v18  ;;  %2141 = vmatmul.mubr.bf16.gmra.mrb[4].mxu1 %v2206_v22 }
  0x75   :  { %2116 = vmatprep.mubr.msk.bf16.mxu0 %vm2468_vm0, %v2467_v0  ;;  %2144 = vmatprep.mubr.msk.bf16.mxu1 %vm2468_vm0, %v2467_v0 }
  0x76   :  { %809 = vmatpush1.bf16.msra.mxu0 %v2223_v23  ;;  %648 = vmatpush1.bf16.msra.mxu1 %v2226_v24 }
  0x77   :  { %810 = vmatprep.subr.bf16.mxu0 %v2231_v25  ;;  %649 = vmatprep.subr.bf16.mxu1 %v2234_v26 }
  0x7a   :  { %811 = vmatpush1.bf16.msra.mxu0 %v2229_v27  ;;  %650 = vmatpush1.bf16.msra.mxu1 %v2232_v28 }
  0x7b   :  { %812 = vmatprep.subr.bf16.mxu0 %v2237_v29  ;;  %651 = vmatprep.subr.bf16.mxu1 %v2240_v30  ;;  %v2264_v29 = vld [vmem:[#allocation8 + $0x8] sm:$0xff]  }
  0x7c   :  { %2117 = vmatmul.mubr.bf16.gmra.mrb[8].mxu0 %v2200_v31  ;;  %2145 = vmatmul.mubr.bf16.gmra.mrb[8].mxu1 %v2207_v32  ;;  %v2266_v30 = vld [vmem:[#allocation8 + $0x88] sm:$0xff]   ;;  %v2267_v31 = vld [vmem:[#allocation8 + $0x50] sm:$0xff]  }
  0x7d   :  { %2120 = vmatprep.mubr.msk.bf16.mxu0 %vm2468_vm0, %v2467_v0  ;;  %2148 = vmatprep.mubr.msk.bf16.mxu1 %vm2468_vm0, %v2467_v0  ;;  %v2269_v32 = vld [vmem:[#allocation8 + $0xd0] sm:$0xff]  }
  0x7e   :  { %813 = vmatpush1.bf16.msra.mxu0 %v2235_v33  ;;  %652 = vmatpush1.bf16.msra.mxu1 %v2238_v34 }
  0x7f   :  { %814 = vmatprep.subr.bf16.mxu0 %v2243_v35  ;;  %653 = vmatprep.subr.bf16.mxu1 %v2246_v36 }
  0x82   :  { %815 = vmatpush1.bf16.msra.mxu0 %v2241_v37  ;;  %654 = vmatpush1.bf16.msra.mxu1 %v2244_v38  ;;  %v2268_v38 = vld [vmem:[#allocation8 + $0x10] sm:$0xff]  }
  0x83   :  { %655 = vmatprep.subr.bf16.mxu1 %v2249_v39  ;;  %816 = vmatprep.subr.bf16.mxu0 %v2252_v40  ;;  %v2270_v39 = vld [vmem:[#allocation8 + $0x90] sm:$0xff]  }
  0x84   :  { %2121 = vmatmul.mubr.bf16.gmra.mrb[12].mxu0 %v2201_v41  ;;  %2149 = vmatmul.mubr.bf16.gmra.mrb[12].mxu1 %v2208_v42  ;;  %v2271_v42 = vld [vmem:[#allocation8 + $0x58] sm:$0xff]  }
  0x85   :  { %2124 = vmatprep.mubr.msk.bf16.mxu0 %vm2468_vm0, %v2467_v0  ;;  %2152 = vmatprep.mubr.msk.bf16.mxu1 %vm2468_vm0, %v2467_v0 }
  0x86   :  { %656 = vmatpush1.bf16.msra.mxu1 %v2247_v43  ;;  %817 = vmatpush1.bf16.msra.mxu0 %v2250_v44  ;;  %v2273_v43 = vld [vmem:[#allocation8 + $0xd8] sm:$0xff]  }
  0x87   :  { %657 = vmatprep.subr.bf16.mxu1 %v2255_v50  ;;  %818 = vmatprep.subr.bf16.mxu0 %v2258_v51 }
  0x8a   :  { %658 = vmatpush1.bf16.msra.mxu1 %v2253_v52  ;;  %819 = vmatpush1.bf16.msra.mxu0 %v2256_v53 }
  0x8b   :  { %1904 = vmatprep.subr.bf16.mxu1 %v2259_v55  ;;  %1998 = vmatprep.subr.bf16.mxu0 %v2261_v56  ;;  %v2272_v56 = vld [vmem:[#allocation8 + $0x18] sm:$0xff]  }
  0x8c   :  { %2125 = vmatmul.mubr.bf16.gmra.mrb[16].mxu0 %v2202_v45  ;;  %2153 = vmatmul.mubr.bf16.gmra.mrb[16].mxu1 %v2209_v46 }
  0x8d   :  { %2128 = vmatprep.mubr.msk.bf16.mxu0 %vm2468_vm0, %v2467_v0  ;;  %2156 = vmatprep.mubr.msk.bf16.mxu1 %vm2468_vm0, %v2467_v0 }
  0x94   :  { %2129 = vmatmul.mubr.bf16.gmra.mrb[20].mxu0 %v2203_v47  ;;  %2157 = vmatmul.mubr.bf16.gmra.mrb[20].mxu1 %v2210_v48 }
  0x95   :  { %2132 = vmatprep.mubr.msk.bf16.mxu0 %vm2468_vm0, %v2467_v0  ;;  %675 = vmatprep.mubr.bf16.mxu1 %v2469_v54 }
  0x9c   :  { %2133 = vmatmul.mubr.bf16.gmra.mrb[24].mxu0 %v2204_v49 }
  0x9d   :  { %836 = vmatprep.mubr.bf16.mxu0 %v2469_v54 }
 0x13f   :  { %v289_v58 = vpop.f32.mrb[0].mxu0  ;;  %v345_v59 = vpop.f32.mrb[0].mxu1 }
 0x140   :  { %v290_v60 = vadd.f32 %v2624_v57, %v289_v58  ;;  %v2110_v61 = vpop.f32.mrb[1].mxu0  ;;  %v346_v62 = vadd.f32 %v2624_v57, %v345_v59  ;;  %v2138_v63 = vpop.f32.mrb[1].mxu1  ;;  %v2274_v58 = vld [vmem:[#allocation8 + $0x98] sm:$0xff]   ;;  %v2275_v59 = vld [vmem:[#allocation8 + $0x60] sm:$0xff]  }
 0x141   :  { %v292_v0 = vpop.f32.mrb[2].mxu0  ;;  %v348_v1 = vpop.f32.mrb[2].mxu1 }
 0x142   :  { %v293_v2 = vadd.f32 %v2624_v57, %v292_v0  ;;  %v2111_v3 = vpop.f32.mrb[3].mxu0  ;;  %v405_v4 = vmax.f32 %v346_v62, 0.0  ;;  %v349_v5 = vadd.f32 %v2624_v57, %v348_v1  ;;  %v2139_v6 = vpop.f32.mrb[3].mxu1  ;;  %v391_v7 = vmax.f32 %v290_v60, 0.0  ;;  %v2277_v60 = vld [vmem:[#allocation8 + $0xe0] sm:$0xff]  }
 0x143   :  { %v2278_v3 = vld [vmem:[#allocation8 + $0xa0] sm:$0xff]   ;;  %v2279_v6 = vld [vmem:[#allocation8 + $0x68] sm:$0xff]  }
 0x144   :  { %v392_v8 = vmax.f32 %v293_v2, 0.0  ;;  %v406_v9 = vmax.f32 %v349_v5, 0.0  ;;  %v2276_v2 = vld [vmem:[#allocation8 + $0x20] sm:$0xff]  }
 0x146   :  { %v416_v10 = vpack.c.bf16 %v392_v8, %v391_v7  ;;  %v2630_v11 = vpack.c.bf16 %v406_v9, %v405_v4  ;;  %v2281_v7 = vld [vmem:[#allocation8 + $0xe8] sm:$0xff]  }
 0x147   :  { %v297_v14 = vpop.f32.mrb[4].mxu0  ;;  %v353_v15 = vpop.f32.mrb[4].mxu1 }
 0x148   :  { %v298_v18 = vadd.f32 %v2624_v57, %v297_v14  ;;  %v2114_v19 = vpop.f32.mrb[5].mxu0  ;;  %676 = vmatmul.mubr.bf16.vlgmr.msra.gmra.mrb[24].mxu1 %v416_v10  ;;  %837 = vmatmul.mubr.bf16.vlgmr.msra.gmra.mrb[28].mxu0 %v416_v10  ;;  %v354_v20 = vadd.f32 %v2624_v57, %v353_v15  ;;  %v2142_v21 = vpop.f32.mrb[5].mxu1 }
 0x149   :  { %v300_v22 = vpop.f32.mrb[6].mxu0  ;;  %685 = vmatprep.mubr.bf16.mxu1 %v2469_v54  ;;  %846 = vmatprep.mubr.bf16.mxu0 %v2469_v54  ;;  %v356_v23 = vpop.f32.mrb[6].mxu1  ;;  %v2282_v21 = vld [vmem:[#allocation8 + $0xa8] sm:$0xff]  }
 0x14a   :  { %v301_v24 = vadd.f32 %v2624_v57, %v300_v22  ;;  %v2115_v25 = vpop.f32.mrb[7].mxu0  ;;  %v407_v26 = vmax.f32 %v354_v20, 0.0  ;;  %v357_v27 = vadd.f32 %v2624_v57, %v356_v23  ;;  %v2143_v28 = vpop.f32.mrb[7].mxu1  ;;  %1905 = vmatpush3.bf16.msra.mxu1 %v2260_v12  ;;  %1999 = vmatpush3.bf16.msra.mxu0 %v2262_v13  ;;  %v393_v33 = vmax.f32 %v298_v18, 0.0  ;;  %v2280_v20 = vld [vmem:[#allocation8 + $0x28] sm:$0xff]   ;;  %v2283_v22 = vld [vmem:[#allocation8 + $0x70] sm:$0xff]  }
 0x14b   :  { %1906 = vmatprep.subr.bf16.mxu1 %v2263_v16  ;;  %2000 = vmatprep.subr.bf16.mxu0 %v2265_v17  ;;  %v2285_v23 = vld [vmem:[#allocation8 + $0xf0] sm:$0xff]  }
 0x14c   :  { %v394_v34 = vmax.f32 %v301_v24, 0.0  ;;  %v408_v35 = vmax.f32 %v357_v27, 0.0 }
 0x14e   :  { %v417_v36 = vpack.c.bf16 %v394_v34, %v393_v33  ;;  %v2638_v37 = vpack.c.bf16 %v408_v35, %v407_v26  ;;  %1907 = vmatpush3.bf16.msra.mxu1 %v2264_v29  ;;  %2001 = vmatpush3.bf16.msra.mxu0 %v2266_v30  ;;  %v2284_v29 = vld [vmem:[#allocation8 + $0x30] sm:$0xff]   ;;  %v2287_v33 = vld [vmem:[#allocation8 + $0x78] sm:$0xff]  }
 0x14f   :  { %v305_v40 = vpop.f32.mrb[8].mxu0  ;;  %v361_v41 = vpop.f32.mrb[8].mxu1  ;;  %1908 = vmatprep.subr.bf16.mxu1 %v2267_v31  ;;  %2002 = vmatprep.subr.bf16.mxu0 %v2269_v32  ;;  %v2286_v30 = vld [vmem:[#allocation8 + $0xb0] sm:$0xff]   ;;  %v2289_v34 = vld [vmem:[#allocation8 + $0xf8] sm:$0xff]  }
 0x150   :  { %v306_v44 = vadd.f32 %v2624_v57, %v305_v40  ;;  %v2118_v45 = vpop.f32.mrb[9].mxu0  ;;  %686 = vmatmul.mubr.bf16.gmra.mrb[28].mxu1 %v417_v36  ;;  %847 = vmatmul.mubr.bf16.gmra.mrb[32].mxu0 %v417_v36  ;;  %v362_v46 = vadd.f32 %v2624_v57, %v361_v41  ;;  %v2146_v47 = vpop.f32.mrb[9].mxu1 }
 0x151   :  { %v308_v48 = vpop.f32.mrb[10].mxu0  ;;  %695 = vmatprep.mubr.bf16.mxu1 %v2469_v54  ;;  %856 = vmatprep.mubr.bf16.mxu0 %v2469_v54  ;;  %v364_v49 = vpop.f32.mrb[10].mxu1  ;;  %v2288_v47 = vld [vmem:[#allocation8 + $0x38] sm:$0xff]  }
 0x152   :  { %v309_v50 = vadd.f32 %v2624_v57, %v308_v48  ;;  %v2119_v51 = vpop.f32.mrb[11].mxu0  ;;  %v409_v52 = vmax.f32 %v362_v46, 0.0  ;;  %v365_v53 = vadd.f32 %v2624_v57, %v364_v49  ;;  %v2147_v55 = vpop.f32.mrb[11].mxu1  ;;  %1909 = vmatpush3.bf16.msra.mxu1 %v2268_v38  ;;  %2003 = vmatpush3.bf16.msra.mxu0 %v2270_v39  ;;  %v395_v61 = vmax.f32 %v306_v44, 0.0 }
 0x153   :  { %1910 = vmatprep.subr.bf16.mxu1 %v2271_v42  ;;  %2004 = vmatprep.subr.bf16.mxu0 %v2273_v43 }
 0x154   :  { %v396_v62 = vmax.f32 %v309_v50, 0.0  ;;  %v410_v63 = vmax.f32 %v365_v53, 0.0 }
 0x156   :  { %v418_v0 = vpack.c.bf16 %v396_v62, %v395_v61  ;;  %v2646_v1 = vpack.c.bf16 %v410_v63, %v409_v52  ;;  %1911 = vmatpush3.bf16.msra.mxu1 %v2272_v56  ;;  %2005 = vmatpush3.bf16.msra.mxu0 %v2274_v58 }
 0x157   :  { %v313_v4 = vpop.f32.mrb[12].mxu0  ;;  %v369_v5 = vpop.f32.mrb[12].mxu1  ;;  %1912 = vmatprep.subr.bf16.mxu1 %v2275_v59  ;;  %2006 = vmatprep.subr.bf16.mxu0 %v2277_v60 }
 0x158   :  { %v314_v8 = vadd.f32 %v2624_v57, %v313_v4  ;;  %v2122_v9 = vpop.f32.mrb[13].mxu0  ;;  %696 = vmatmul.mubr.bf16.gmra.mrb[32].mxu1 %v418_v0  ;;  %857 = vmatmul.mubr.bf16.gmra.mrb[36].mxu0 %v418_v0  ;;  %v370_v10 = vadd.f32 %v2624_v57, %v369_v5  ;;  %v2150_v12 = vpop.f32.mrb[13].mxu1 }
 0x159   :  { %v316_v13 = vpop.f32.mrb[14].mxu0  ;;  %705 = vmatprep.mubr.bf16.mxu1 %v2469_v54  ;;  %866 = vmatprep.mubr.bf16.mxu0 %v2469_v54  ;;  %v372_v14 = vpop.f32.mrb[14].mxu1 }
 0x15a   :  { %v317_v15 = vadd.f32 %v2624_v57, %v316_v13  ;;  %v2123_v16 = vpop.f32.mrb[15].mxu0  ;;  %v411_v17 = vmax.f32 %v370_v10, 0.0  ;;  %v373_v18 = vadd.f32 %v2624_v57, %v372_v14  ;;  %v2151_v19 = vpop.f32.mrb[15].mxu1  ;;  %1913 = vmatpush3.bf16.msra.mxu1 %v2276_v2  ;;  %2007 = vmatpush3.bf16.msra.mxu0 %v2278_v3  ;;  %v397_v24 = vmax.f32 %v314_v8, 0.0 }
 0x15b   :  { %1914 = vmatprep.subr.bf16.mxu1 %v2279_v6  ;;  %2008 = vmatprep.subr.bf16.mxu0 %v2281_v7  ;;  %v461_v19 = vld [vmem:[%s2848_s4] sm:$0xf] }
 0x15c   :  { %v398_v25 = vmax.f32 %v317_v15, 0.0  ;;  %v412_v26 = vmax.f32 %v373_v18, 0.0 }
 0x15e   :  { %v419_v27 = vpack.c.bf16 %v398_v25, %v397_v24  ;;  %v2654_v28 = vpack.c.bf16 %v412_v26, %v411_v17  ;;  %1915 = vmatpush3.bf16.msra.mxu1 %v2280_v20  ;;  %2009 = vmatpush3.bf16.msra.mxu0 %v2282_v21 }
 0x15f   :  { %v321_v31 = vpop.f32.mrb[16].mxu0  ;;  %v377_v32 = vpop.f32.mrb[16].mxu1  ;;  %1916 = vmatprep.subr.bf16.mxu1 %v2283_v22  ;;  %2010 = vmatprep.subr.bf16.mxu0 %v2285_v23 }
 0x160   :  { %v322_v35 = vadd.f32 %v2624_v57, %v321_v31  ;;  %v2126_v36 = vpop.f32.mrb[17].mxu0  ;;  %706 = vmatmul.mubr.bf16.gmra.mrb[36].mxu1 %v419_v27  ;;  %867 = vmatmul.mubr.bf16.gmra.mrb[40].mxu0 %v419_v27  ;;  %v378_v38 = vadd.f32 %v2624_v57, %v377_v32  ;;  %v2154_v39 = vpop.f32.mrb[17].mxu1 }
 0x161   :  { %v324_v40 = vpop.f32.mrb[18].mxu0  ;;  %715 = vmatprep.mubr.bf16.mxu1 %v2469_v54  ;;  %876 = vmatprep.mubr.bf16.mxu0 %v2469_v54  ;;  %v380_v41 = vpop.f32.mrb[18].mxu1 }
 0x162   :  { %v325_v42 = vadd.f32 %v2624_v57, %v324_v40  ;;  %v2127_v43 = vpop.f32.mrb[19].mxu0  ;;  %v413_v44 = vmax.f32 %v378_v38, 0.0  ;;  %v381_v45 = vadd.f32 %v2624_v57, %v380_v41  ;;  %v2155_v46 = vpop.f32.mrb[19].mxu1  ;;  %1917 = vmatpush3.bf16.msra.mxu1 %v2284_v29  ;;  %2011 = vmatpush3.bf16.msra.mxu0 %v2286_v30  ;;  %v399_v48 = vmax.f32 %v322_v35, 0.0 }
 0x163   :  { %1918 = vmatprep.subr.bf16.mxu1 %v2287_v33  ;;  %2012 = vmatprep.subr.bf16.mxu0 %v2289_v34 }
 0x164   :  { %v400_v49 = vmax.f32 %v325_v42, 0.0  ;;  %v414_v50 = vmax.f32 %v381_v45, 0.0 }
 0x166   :  { %v420_v51 = vpack.c.bf16 %v400_v49, %v399_v48  ;;  %v427_v52 = vpack.c.bf16 %v414_v50, %v413_v44  ;;  %1919 = vmatpush3.bf16.msra.mxu1 %v2288_v47 }
 0x167   :  { %v329_v53 = vpop.f32.mrb[20].mxu0  ;;  %v385_v55 = vpop.f32.mrb[20].mxu1 }
 0x168   :  { %v330_v56 = vadd.f32 %v2624_v57, %v329_v53  ;;  %v2130_v58 = vpop.f32.mrb[21].mxu0  ;;  %716 = vmatmul.mubr.bf16.gmra.mrb[40].mxu1 %v420_v51  ;;  %877 = vmatmul.mubr.bf16.gmra.mrb[44].mxu0 %v420_v51  ;;  %v386_v59 = vadd.f32 %v2624_v57, %v385_v55  ;;  %v2158_v60 = vpop.f32.mrb[21].mxu1 }
 0x169   :  { %v332_v61 = vpop.f32.mrb[22].mxu0  ;;  %725 = vmatprep.mubr.bf16.mxu1 %v2469_v54  ;;  %886 = vmatprep.mubr.bf16.mxu0 %v2469_v54  ;;  %v388_v62 = vpop.f32.mrb[22].mxu1 }
 0x16a   :  { %v333_v63 = vadd.f32 %v2624_v57, %v332_v61  ;;  %v2131_v0 = vpop.f32.mrb[23].mxu0  ;;  %v2159_v2 = vpop.f32.mrb[23].mxu1  ;;  %v401_v3 = vmax.f32 %v330_v56, 0.0 }
 0x16c   :  { %v402_v4 = vmax.f32 %v333_v63, 0.0 }
 0x16e   :  { %v421_v5 = vpack.c.bf16 %v402_v4, %v401_v3 }
 0x16f   :  { %v337_v6 = vpop.f32.mrb[24].mxu0 }
 0x170   :  { %v338_v7 = vadd.f32 %v2624_v57, %v337_v6  ;;  %v2134_v8 = vpop.f32.mrb[25].mxu0  ;;  %726 = vmatmul.mubr.bf16.gmra.mrb[44].mxu1 %v421_v5  ;;  %887 = vmatmul.mubr.bf16.gmra.mrb[48].mxu0 %v421_v5 }
 0x171   :  { %v340_v9 = vpop.f32.mrb[26].mxu0  ;;  %735 = vmatprep.mubr.bf16.mxu1 %v2469_v54  ;;  %896 = vmatprep.mubr.bf16.mxu0 %v2469_v54 }
 0x172   :  { %v341_v10 = vadd.f32 %v2624_v57, %v340_v9  ;;  %v2135_v12 = vpop.f32.mrb[27].mxu0  ;;  %v403_v13 = vmax.f32 %v338_v7, 0.0  ;;  %v2290_v57 = vld [vmem:[#allocation8 + $0xb8] sm:$0xff]  }
 0x173   :  { %2013 = vmatpush3.bf16.msra.mxu0 %v2290_v57 }
 0x174   :  { %v404_v14 = vmax.f32 %v341_v10, 0.0 }
 0x176   :  { %v422_v15 = vpack.c.bf16 %v404_v14, %v403_v13 }
 0x178   :  { %736 = vmatmul.mubr.bf16.gmra.mrb[48].mxu1 %v422_v15  ;;  %897 = vmatmul.mubr.bf16.gmra.mrb[52].mxu0 %v422_v15 }
 0x179   :  { %745 = vmatprep.mubr.bf16.mxu1 %v2469_v54  ;;  %906 = vmatprep.mubr.bf16.mxu0 %v2469_v54 }
 0x180   :  { %746 = vmatmul.mubr.bf16.gmra.mrb[52].mxu1 %v2630_v11  ;;  %907 = vmatmul.mubr.bf16.gmra.mrb[56].mxu0 %v2630_v11  ;;  %v415_v11 = vmax.f32 %v386_v59, 0.0 }
 0x181   :  { %755 = vmatprep.mubr.bf16.mxu1 %v2469_v54  ;;  %916 = vmatprep.mubr.bf16.mxu0 %v2469_v54 }
 0x188   :  { %756 = vmatmul.mubr.bf16.gmra.mrb[56].mxu1 %v2638_v37  ;;  %917 = vmatmul.mubr.bf16.gmra.mrb[60].mxu0 %v2638_v37  ;;  %v428_v37 = vpack.c.bf16 %v415_v11, %v415_v11 }
 0x189   :  { %765 = vmatprep.mubr.bf16.mxu1 %v2469_v54  ;;  %926 = vmatprep.mubr.bf16.mxu0 %v2469_v54 }
 0x190   :  { %766 = vmatmul.mubr.bf16.gmra.mrb[60].mxu1 %v2646_v1  ;;  %927 = vmatmul.mubr.bf16.gmra.mrb[64].mxu0 %v2646_v1  ;;  %v463_v1 = vlaneseq }
 0x191   :  { %775 = vmatprep.mubr.bf16.mxu1 %v2469_v54  ;;  %936 = vmatprep.mubr.bf16.mxu0 %v2469_v54 }
 0x192   :  { %v464_v16 = vshrl.u32 %v463_v1, 7 }
 0x194   :  { %v465_v17 = vsub.s32 0, %v464_v16  ;;  %v473_v18 = vsub.s32 2, %v464_v16  ;;  %v469_v20 = vsub.s32 1, %v464_v16  ;;  %v477_v21 = vsub.s32 3, %v464_v16 }
 0x196   :  { %v2694_v22 = vrot.slane %v461_v19, %v465_v17  ;;  %v2696_v23 = vrot.slane %v461_v19, %v473_v18  ;;  %v2698_v24 = vrot.slane %v461_v19, %v469_v20 }
 0x198   :  { %776 = vmatmul.mubr.bf16.gmra.mrb[64].mxu1 %v2654_v28  ;;  %937 = vmatmul.mubr.bf16.gmra.mrb[68].mxu0 %v2654_v28 }
 0x199   :  { %785 = vmatprep.mubr.bf16.mxu1 %v2469_v54  ;;  %946 = vmatprep.mubr.bf16.mxu0 %v2469_v54 }
 0x1a0   :  { %786 = vmatmul.mubr.bf16.gmra.mrb[68].mxu1 %v427_v52  ;;  %947 = vmatmul.mubr.bf16.gmra.mrb[72].mxu0 %v427_v52 }
 0x1a1   :  { %795 = vmatprep.mubr.bf16.mxu1 %v2469_v54  ;;  %956 = vmatprep.mubr.bf16.mxu0 %v2469_v54  ;;  %v2700_v54 = vrot.slane %v461_v19, %v477_v21 }
 0x1a8   :  { %796 = vmatmul.mubr.bf16.gmra.mrb[72].mxu1 %v428_v37  ;;  %957 = vmatmul.mubr.bf16.gmra.mrb[76].mxu0 %v428_v37 }
 0x21b   :  { %v677_v25 = vpop.f32.mrb[24].mxu1  ;;  %v838_v26 = vpop.f32.mrb[28].mxu0 }
 0x21c   :  { %v678_v27 = vadd.f32 %v677_v25, %v2694_v22  ;;  %v839_v28 = vadd.f32 %v838_v26, %v2696_v23  ;;  %v679_v29 = vpop.f32.mrb[25].mxu1  ;;  %v840_v30 = vpop.f32.mrb[29].mxu0 }
 0x21d   :  { %v680_v31 = vadd.f32 %v679_v29, %v2698_v24  ;;  %v841_v32 = vadd.f32 %v840_v30, %v2700_v54  ;;  %v681_v33 = vpop.f32.mrb[26].mxu1  ;;  %v842_v34 = vpop.f32.mrb[30].mxu0 }
 0x21e   :  { %v682_v35 = vadd.f32 %v681_v33, %v2694_v22  ;;  %v843_v36 = vadd.f32 %v842_v34, %v2696_v23  ;;  %v683_v38 = vpop.f32.mrb[27].mxu1  ;;  %v844_v39 = vpop.f32.mrb[31].mxu0  ;;  %v965_v42 = vmax.f32 %v678_v27, 0.0  ;;  %v967_v43 = vmax.f32 %v839_v28, 0.0 }
 0x21f   :  { %v684_v40 = vadd.f32 %v683_v38, %v2698_v24  ;;  %v845_v41 = vadd.f32 %v844_v39, %v2700_v54  ;;  %v966_v46 = vmax.f32 %v680_v31, 0.0  ;;  %v968_v47 = vmax.f32 %v841_v32, 0.0 }
 0x220   :  { %v969_v44 = vmax.f32 %v682_v35, 0.0  ;;  %v971_v45 = vmax.f32 %v843_v36, 0.0 }
 0x221   :  { %v970_v48 = vmax.f32 %v684_v40, 0.0  ;;  %v972_v49 = vmax.f32 %v845_v41, 0.0 }
 0x222   :  { %v1065_v50 = vpack.c.bf16 %v969_v44, %v965_v42  ;;  %v1067_v51 = vpack.c.bf16 %v971_v45, %v967_v43 }
 0x223   :  { %v1066_v52 = vpack.c.bf16 %v970_v48, %v966_v46  ;;  %v1068_v53 = vpack.c.bf16 %v972_v49, %v968_v47  ;;  %v687_v55 = vpop.f32.mrb[28].mxu1  ;;  %v848_v56 = vpop.f32.mrb[32].mxu0 }
 0x224   :  { %v688_v58 = vadd.f32 %v687_v55, %v2694_v22  ;;  %v849_v59 = vadd.f32 %v848_v56, %v2696_v23  ;;  %v689_v60 = vpop.f32.mrb[29].mxu1  ;;  %v850_v61 = vpop.f32.mrb[33].mxu0 }
 0x225   :  { %v690_v62 = vadd.f32 %v689_v60, %v2698_v24  ;;  %v851_v63 = vadd.f32 %v850_v61, %v2700_v54  ;;  %v691_v0 = vpop.f32.mrb[30].mxu1  ;;  %v852_v2 = vpop.f32.mrb[34].mxu0  ;;  %1412 = vmatprep.mubr.bf16.mxu1 %v1066_v52  ;;  %1548 = vmatprep.mubr.bf16.mxu0 %v1068_v53 }
 0x226   :  { %v692_v3 = vadd.f32 %v691_v0, %v2694_v22  ;;  %v853_v4 = vadd.f32 %v852_v2, %v2696_v23  ;;  %v693_v5 = vpop.f32.mrb[31].mxu1  ;;  %v854_v6 = vpop.f32.mrb[35].mxu0  ;;  %1413 = vmatmul.mubr.bf16.vlgmr.msra.gmra.mrb[76].mxu1 %v1065_v50  ;;  %1549 = vmatmul.mubr.bf16.vlgmr.msra.gmra.mrb[80].mxu0 %v1067_v51  ;;  %v973_v9 = vmax.f32 %v688_v58, 0.0  ;;  %v975_v10 = vmax.f32 %v849_v59, 0.0 }
 0x227   :  { %v694_v7 = vadd.f32 %v693_v5, %v2698_v24  ;;  %v855_v8 = vadd.f32 %v854_v6, %v2700_v54  ;;  %v974_v14 = vmax.f32 %v690_v62, 0.0  ;;  %v976_v15 = vmax.f32 %v851_v63, 0.0 }
 0x228   :  { %v977_v12 = vmax.f32 %v692_v3, 0.0  ;;  %v979_v13 = vmax.f32 %v853_v4, 0.0 }
 0x229   :  { %v978_v57 = vmax.f32 %v694_v7, 0.0  ;;  %v980_v11 = vmax.f32 %v855_v8, 0.0 }
 0x22a   :  { %v1069_v37 = vpack.c.bf16 %v977_v12, %v973_v9  ;;  %v1071_v1 = vpack.c.bf16 %v979_v13, %v975_v10 }
 0x22b   :  { %v1070_v16 = vpack.c.bf16 %v978_v57, %v974_v14  ;;  %v1072_v17 = vpack.c.bf16 %v980_v11, %v976_v15  ;;  %v697_v18 = vpop.f32.mrb[32].mxu1  ;;  %v858_v19 = vpop.f32.mrb[36].mxu0 }
 0x22c   :  { %v698_v20 = vadd.f32 %v697_v18, %v2694_v22  ;;  %v859_v21 = vadd.f32 %v858_v19, %v2696_v23  ;;  %v699_v25 = vpop.f32.mrb[33].mxu1  ;;  %v860_v26 = vpop.f32.mrb[37].mxu0 }
 0x22d   :  { %v700_v27 = vadd.f32 %v699_v25, %v2698_v24  ;;  %v861_v28 = vadd.f32 %v860_v26, %v2700_v54  ;;  %v701_v29 = vpop.f32.mrb[34].mxu1  ;;  %v862_v30 = vpop.f32.mrb[38].mxu0  ;;  %1420 = vmatprep.mubr.bf16.mxu1 %v1070_v16  ;;  %1556 = vmatprep.mubr.bf16.mxu0 %v1072_v17 }
 0x22e   :  { %v702_v31 = vadd.f32 %v701_v29, %v2694_v22  ;;  %v863_v32 = vadd.f32 %v862_v30, %v2696_v23  ;;  %v703_v33 = vpop.f32.mrb[35].mxu1  ;;  %v864_v34 = vpop.f32.mrb[39].mxu0  ;;  %1421 = vmatmul.mubr.bf16.gmra.mrb[80].mxu1 %v1069_v37  ;;  %1557 = vmatmul.mubr.bf16.gmra.mrb[84].mxu0 %v1071_v1  ;;  %v981_v38 = vmax.f32 %v698_v20, 0.0  ;;  %v983_v39 = vmax.f32 %v859_v21, 0.0 }
 0x22f   :  { %v704_v35 = vadd.f32 %v703_v33, %v2698_v24  ;;  %v865_v36 = vadd.f32 %v864_v34, %v2700_v54  ;;  %v982_v42 = vmax.f32 %v700_v27, 0.0  ;;  %v984_v43 = vmax.f32 %v861_v28, 0.0 }
 0x230   :  { %v985_v40 = vmax.f32 %v702_v31, 0.0  ;;  %v987_v41 = vmax.f32 %v863_v32, 0.0 }
 0x231   :  { %v986_v44 = vmax.f32 %v704_v35, 0.0  ;;  %v988_v45 = vmax.f32 %v865_v36, 0.0 }
 0x232   :  { %v1073_v46 = vpack.c.bf16 %v985_v40, %v981_v38  ;;  %v1075_v47 = vpack.c.bf16 %v987_v41, %v983_v39 }
 0x233   :  { %v1074_v48 = vpack.c.bf16 %v986_v44, %v982_v42  ;;  %v1076_v49 = vpack.c.bf16 %v988_v45, %v984_v43  ;;  %v707_v50 = vpop.f32.mrb[36].mxu1  ;;  %v868_v51 = vpop.f32.mrb[40].mxu0 }
 0x234   :  { %v708_v52 = vadd.f32 %v707_v50, %v2694_v22  ;;  %v869_v53 = vadd.f32 %v868_v51, %v2696_v23  ;;  %v709_v55 = vpop.f32.mrb[37].mxu1  ;;  %v870_v56 = vpop.f32.mrb[41].mxu0 }
 0x235   :  { %v710_v58 = vadd.f32 %v709_v55, %v2698_v24  ;;  %v871_v59 = vadd.f32 %v870_v56, %v2700_v54  ;;  %v711_v60 = vpop.f32.mrb[38].mxu1  ;;  %v872_v61 = vpop.f32.mrb[42].mxu0  ;;  %1428 = vmatprep.mubr.bf16.mxu1 %v1074_v48  ;;  %1564 = vmatprep.mubr.bf16.mxu0 %v1076_v49 }
 0x236   :  { %v712_v62 = vadd.f32 %v711_v60, %v2694_v22  ;;  %v873_v63 = vadd.f32 %v872_v61, %v2696_v23  ;;  %v713_v0 = vpop.f32.mrb[39].mxu1  ;;  %v874_v2 = vpop.f32.mrb[43].mxu0  ;;  %1429 = vmatmul.mubr.bf16.gmra.mrb[84].mxu1 %v1073_v46  ;;  %1565 = vmatmul.mubr.bf16.gmra.mrb[88].mxu0 %v1075_v47  ;;  %v989_v5 = vmax.f32 %v708_v52, 0.0  ;;  %v991_v6 = vmax.f32 %v869_v53, 0.0 }
 0x237   :  { %v714_v3 = vadd.f32 %v713_v0, %v2698_v24  ;;  %v875_v4 = vadd.f32 %v874_v2, %v2700_v54  ;;  %v990_v9 = vmax.f32 %v710_v58, 0.0  ;;  %v992_v10 = vmax.f32 %v871_v59, 0.0 }
 0x238   :  { %v993_v7 = vmax.f32 %v712_v62, 0.0  ;;  %v995_v8 = vmax.f32 %v873_v63, 0.0 }
 0x239   :  { %v994_v12 = vmax.f32 %v714_v3, 0.0  ;;  %v996_v13 = vmax.f32 %v875_v4, 0.0 }
 0x23a   :  { %v1077_v14 = vpack.c.bf16 %v993_v7, %v989_v5  ;;  %v1079_v15 = vpack.c.bf16 %v995_v8, %v991_v6 }
 0x23b   :  { %v1078_v57 = vpack.c.bf16 %v994_v12, %v990_v9  ;;  %v1080_v11 = vpack.c.bf16 %v996_v13, %v992_v10  ;;  %v717_v37 = vpop.f32.mrb[40].mxu1  ;;  %v878_v1 = vpop.f32.mrb[44].mxu0 }
 0x23c   :  { %v718_v16 = vadd.f32 %v717_v37, %v2694_v22  ;;  %v879_v17 = vadd.f32 %v878_v1, %v2696_v23  ;;  %v719_v18 = vpop.f32.mrb[41].mxu1  ;;  %v880_v19 = vpop.f32.mrb[45].mxu0 }
 0x23d   :  { %v720_v20 = vadd.f32 %v719_v18, %v2698_v24  ;;  %v881_v21 = vadd.f32 %v880_v19, %v2700_v54  ;;  %v721_v25 = vpop.f32.mrb[42].mxu1  ;;  %v882_v26 = vpop.f32.mrb[46].mxu0  ;;  %1436 = vmatprep.mubr.bf16.mxu1 %v1078_v57  ;;  %1572 = vmatprep.mubr.bf16.mxu0 %v1080_v11 }
 0x23e   :  { %v722_v27 = vadd.f32 %v721_v25, %v2694_v22  ;;  %v883_v28 = vadd.f32 %v882_v26, %v2696_v23  ;;  %v723_v29 = vpop.f32.mrb[43].mxu1  ;;  %v884_v30 = vpop.f32.mrb[47].mxu0  ;;  %1437 = vmatmul.mubr.bf16.gmra.mrb[88].mxu1 %v1077_v14  ;;  %1573 = vmatmul.mubr.bf16.gmra.mrb[92].mxu0 %v1079_v15  ;;  %v997_v33 = vmax.f32 %v718_v16, 0.0  ;;  %v999_v34 = vmax.f32 %v879_v17, 0.0 }
 0x23f   :  { %v724_v31 = vadd.f32 %v723_v29, %v2698_v24  ;;  %v885_v32 = vadd.f32 %v884_v30, %v2700_v54  ;;  %v998_v38 = vmax.f32 %v720_v20, 0.0  ;;  %v1000_v39 = vmax.f32 %v881_v21, 0.0 }
 0x240   :  { %v1001_v35 = vmax.f32 %v722_v27, 0.0  ;;  %v1003_v36 = vmax.f32 %v883_v28, 0.0 }
 0x241   :  { %v1002_v40 = vmax.f32 %v724_v31, 0.0  ;;  %v1004_v41 = vmax.f32 %v885_v32, 0.0 }
 0x242   :  { %v1081_v42 = vpack.c.bf16 %v1001_v35, %v997_v33  ;;  %v1083_v43 = vpack.c.bf16 %v1003_v36, %v999_v34 }
 0x243   :  { %v1082_v44 = vpack.c.bf16 %v1002_v40, %v998_v38  ;;  %v1084_v45 = vpack.c.bf16 %v1004_v41, %v1000_v39  ;;  %v727_v46 = vpop.f32.mrb[44].mxu1  ;;  %v888_v47 = vpop.f32.mrb[48].mxu0 }
 0x244   :  { %v728_v48 = vadd.f32 %v727_v46, %v2694_v22  ;;  %v889_v49 = vadd.f32 %v888_v47, %v2696_v23  ;;  %v729_v50 = vpop.f32.mrb[45].mxu1  ;;  %v890_v51 = vpop.f32.mrb[49].mxu0 }
 0x245   :  { %v730_v52 = vadd.f32 %v729_v50, %v2698_v24  ;;  %v891_v53 = vadd.f32 %v890_v51, %v2700_v54  ;;  %v731_v55 = vpop.f32.mrb[46].mxu1  ;;  %v892_v56 = vpop.f32.mrb[50].mxu0  ;;  %1444 = vmatprep.mubr.bf16.mxu1 %v1082_v44  ;;  %1580 = vmatprep.mubr.bf16.mxu0 %v1084_v45 }
 0x246   :  { %v732_v58 = vadd.f32 %v731_v55, %v2694_v22  ;;  %v893_v59 = vadd.f32 %v892_v56, %v2696_v23  ;;  %v733_v60 = vpop.f32.mrb[47].mxu1  ;;  %v894_v61 = vpop.f32.mrb[51].mxu0  ;;  %1445 = vmatmul.mubr.bf16.gmra.mrb[92].mxu1 %v1081_v42  ;;  %1581 = vmatmul.mubr.bf16.gmra.mrb[96].mxu0 %v1083_v43  ;;  %v1005_v0 = vmax.f32 %v728_v48, 0.0  ;;  %v1007_v2 = vmax.f32 %v889_v49, 0.0 }
 0x247   :  { %v734_v62 = vadd.f32 %v733_v60, %v2698_v24  ;;  %v895_v63 = vadd.f32 %v894_v61, %v2700_v54  ;;  %v1006_v5 = vmax.f32 %v730_v52, 0.0  ;;  %v1008_v6 = vmax.f32 %v891_v53, 0.0 }
 0x248   :  { %v1009_v3 = vmax.f32 %v732_v58, 0.0  ;;  %v1011_v4 = vmax.f32 %v893_v59, 0.0 }
 0x249   :  { %v1010_v7 = vmax.f32 %v734_v62, 0.0  ;;  %v1012_v8 = vmax.f32 %v895_v63, 0.0 }
 0x24a   :  { %v1085_v9 = vpack.c.bf16 %v1009_v3, %v1005_v0  ;;  %v1087_v10 = vpack.c.bf16 %v1011_v4, %v1007_v2 }
 0x24b   :  { %v1086_v12 = vpack.c.bf16 %v1010_v7, %v1006_v5  ;;  %v1088_v13 = vpack.c.bf16 %v1012_v8, %v1008_v6  ;;  %v737_v14 = vpop.f32.mrb[48].mxu1  ;;  %v898_v15 = vpop.f32.mrb[52].mxu0 }
 0x24c   :  { %v738_v57 = vadd.f32 %v737_v14, %v2694_v22  ;;  %v899_v11 = vadd.f32 %v898_v15, %v2696_v23  ;;  %v739_v37 = vpop.f32.mrb[49].mxu1  ;;  %v900_v1 = vpop.f32.mrb[53].mxu0 }
 0x24d   :  { %v740_v16 = vadd.f32 %v739_v37, %v2698_v24  ;;  %v901_v17 = vadd.f32 %v900_v1, %v2700_v54  ;;  %v741_v18 = vpop.f32.mrb[50].mxu1  ;;  %v902_v19 = vpop.f32.mrb[54].mxu0  ;;  %1452 = vmatprep.mubr.bf16.mxu1 %v1086_v12  ;;  %1588 = vmatprep.mubr.bf16.mxu0 %v1088_v13 }
 0x24e   :  { %v742_v20 = vadd.f32 %v741_v18, %v2694_v22  ;;  %v903_v21 = vadd.f32 %v902_v19, %v2696_v23  ;;  %v743_v25 = vpop.f32.mrb[51].mxu1  ;;  %v904_v26 = vpop.f32.mrb[55].mxu0  ;;  %1453 = vmatmul.mubr.bf16.gmra.mrb[96].mxu1 %v1085_v9  ;;  %1589 = vmatmul.mubr.bf16.gmra.mrb[100].mxu0 %v1087_v10  ;;  %v1013_v29 = vmax.f32 %v738_v57, 0.0  ;;  %v1015_v30 = vmax.f32 %v899_v11, 0.0 }
 0x24f   :  { %v744_v27 = vadd.f32 %v743_v25, %v2698_v24  ;;  %v905_v28 = vadd.f32 %v904_v26, %v2700_v54  ;;  %v1014_v33 = vmax.f32 %v740_v16, 0.0  ;;  %v1016_v34 = vmax.f32 %v901_v17, 0.0 }
 0x250   :  { %v1017_v31 = vmax.f32 %v742_v20, 0.0  ;;  %v1019_v32 = vmax.f32 %v903_v21, 0.0 }
 0x251   :  { %v1018_v35 = vmax.f32 %v744_v27, 0.0  ;;  %v1020_v36 = vmax.f32 %v905_v28, 0.0 }
 0x252   :  { %v1089_v38 = vpack.c.bf16 %v1017_v31, %v1013_v29  ;;  %v1091_v39 = vpack.c.bf16 %v1019_v32, %v1015_v30 }
 0x253   :  { %v1090_v40 = vpack.c.bf16 %v1018_v35, %v1014_v33  ;;  %v1092_v41 = vpack.c.bf16 %v1020_v36, %v1016_v34  ;;  %v747_v42 = vpop.f32.mrb[52].mxu1  ;;  %v908_v43 = vpop.f32.mrb[56].mxu0 }
 0x254   :  { %v748_v44 = vadd.f32 %v747_v42, %v2694_v22  ;;  %v909_v45 = vadd.f32 %v908_v43, %v2696_v23  ;;  %v749_v46 = vpop.f32.mrb[53].mxu1  ;;  %v910_v47 = vpop.f32.mrb[57].mxu0 }
 0x255   :  { %v750_v48 = vadd.f32 %v749_v46, %v2698_v24  ;;  %v911_v49 = vadd.f32 %v910_v47, %v2700_v54  ;;  %v751_v50 = vpop.f32.mrb[54].mxu1  ;;  %v912_v51 = vpop.f32.mrb[58].mxu0  ;;  %1460 = vmatprep.mubr.bf16.mxu1 %v1090_v40  ;;  %1596 = vmatprep.mubr.bf16.mxu0 %v1092_v41 }
 0x256   :  { %v752_v52 = vadd.f32 %v751_v50, %v2694_v22  ;;  %v913_v53 = vadd.f32 %v912_v51, %v2696_v23  ;;  %v753_v55 = vpop.f32.mrb[55].mxu1  ;;  %v914_v56 = vpop.f32.mrb[59].mxu0  ;;  %1461 = vmatmul.mubr.bf16.gmra.mrb[100].mxu1 %v1089_v38  ;;  %1597 = vmatmul.mubr.bf16.gmra.mrb[104].mxu0 %v1091_v39  ;;  %v1021_v60 = vmax.f32 %v748_v44, 0.0  ;;  %v1023_v61 = vmax.f32 %v909_v45, 0.0 }
 0x257   :  { %v754_v58 = vadd.f32 %v753_v55, %v2698_v24  ;;  %v915_v59 = vadd.f32 %v914_v56, %v2700_v54  ;;  %v1022_v0 = vmax.f32 %v750_v48, 0.0  ;;  %v1024_v2 = vmax.f32 %v911_v49, 0.0 }
 0x258   :  { %v1025_v62 = vmax.f32 %v752_v52, 0.0  ;;  %v1027_v63 = vmax.f32 %v913_v53, 0.0 }
 0x259   :  { %v1026_v3 = vmax.f32 %v754_v58, 0.0  ;;  %v1028_v4 = vmax.f32 %v915_v59, 0.0 }
 0x25a   :  { %v1093_v5 = vpack.c.bf16 %v1025_v62, %v1021_v60  ;;  %v1095_v6 = vpack.c.bf16 %v1027_v63, %v1023_v61 }
 0x25b   :  { %v1094_v7 = vpack.c.bf16 %v1026_v3, %v1022_v0  ;;  %v1096_v8 = vpack.c.bf16 %v1028_v4, %v1024_v2  ;;  %v757_v9 = vpop.f32.mrb[56].mxu1  ;;  %v918_v10 = vpop.f32.mrb[60].mxu0 }
 0x25c   :  { %v758_v12 = vadd.f32 %v757_v9, %v2694_v22  ;;  %v919_v13 = vadd.f32 %v918_v10, %v2696_v23  ;;  %v759_v14 = vpop.f32.mrb[57].mxu1  ;;  %v920_v15 = vpop.f32.mrb[61].mxu0 }
 0x25d   :  { %v760_v57 = vadd.f32 %v759_v14, %v2698_v24  ;;  %v921_v11 = vadd.f32 %v920_v15, %v2700_v54  ;;  %v761_v37 = vpop.f32.mrb[58].mxu1  ;;  %v922_v1 = vpop.f32.mrb[62].mxu0  ;;  %1468 = vmatprep.mubr.bf16.mxu1 %v1094_v7  ;;  %1604 = vmatprep.mubr.bf16.mxu0 %v1096_v8 }
 0x25e   :  { %v762_v16 = vadd.f32 %v761_v37, %v2694_v22  ;;  %v923_v17 = vadd.f32 %v922_v1, %v2696_v23  ;;  %v763_v18 = vpop.f32.mrb[59].mxu1  ;;  %v924_v19 = vpop.f32.mrb[63].mxu0  ;;  %1469 = vmatmul.mubr.bf16.gmra.mrb[104].mxu1 %v1093_v5  ;;  %1605 = vmatmul.mubr.bf16.gmra.mrb[108].mxu0 %v1095_v6  ;;  %v1029_v25 = vmax.f32 %v758_v12, 0.0  ;;  %v1031_v26 = vmax.f32 %v919_v13, 0.0 }
 0x25f   :  { %v764_v20 = vadd.f32 %v763_v18, %v2698_v24  ;;  %v925_v21 = vadd.f32 %v924_v19, %v2700_v54  ;;  %v1030_v29 = vmax.f32 %v760_v57, 0.0  ;;  %v1032_v30 = vmax.f32 %v921_v11, 0.0 }
 0x260   :  { %v1033_v27 = vmax.f32 %v762_v16, 0.0  ;;  %v1035_v28 = vmax.f32 %v923_v17, 0.0 }
 0x261   :  { %v1034_v31 = vmax.f32 %v764_v20, 0.0  ;;  %v1036_v32 = vmax.f32 %v925_v21, 0.0 }
 0x262   :  { %v1097_v33 = vpack.c.bf16 %v1033_v27, %v1029_v25  ;;  %v1099_v34 = vpack.c.bf16 %v1035_v28, %v1031_v26 }
 0x263   :  { %v1098_v35 = vpack.c.bf16 %v1034_v31, %v1030_v29  ;;  %v1100_v36 = vpack.c.bf16 %v1036_v32, %v1032_v30  ;;  %v767_v38 = vpop.f32.mrb[60].mxu1  ;;  %v928_v39 = vpop.f32.mrb[64].mxu0 }
 0x264   :  { %v768_v40 = vadd.f32 %v767_v38, %v2694_v22  ;;  %v929_v41 = vadd.f32 %v928_v39, %v2696_v23  ;;  %v769_v42 = vpop.f32.mrb[61].mxu1  ;;  %v930_v43 = vpop.f32.mrb[65].mxu0 }
 0x265   :  { %v770_v44 = vadd.f32 %v769_v42, %v2698_v24  ;;  %v931_v45 = vadd.f32 %v930_v43, %v2700_v54  ;;  %v771_v46 = vpop.f32.mrb[62].mxu1  ;;  %v932_v47 = vpop.f32.mrb[66].mxu0  ;;  %1476 = vmatprep.mubr.bf16.mxu1 %v1098_v35  ;;  %1612 = vmatprep.mubr.bf16.mxu0 %v1100_v36 }
 0x266   :  { %v772_v48 = vadd.f32 %v771_v46, %v2694_v22  ;;  %v933_v49 = vadd.f32 %v932_v47, %v2696_v23  ;;  %v773_v50 = vpop.f32.mrb[63].mxu1  ;;  %v934_v51 = vpop.f32.mrb[67].mxu0  ;;  %1477 = vmatmul.mubr.bf16.gmra.mrb[108].mxu1 %v1097_v33  ;;  %1613 = vmatmul.mubr.bf16.gmra.mrb[112].mxu0 %v1099_v34  ;;  %v1037_v55 = vmax.f32 %v768_v40, 0.0  ;;  %v1039_v56 = vmax.f32 %v929_v41, 0.0 }
 0x267   :  { %v774_v52 = vadd.f32 %v773_v50, %v2698_v24  ;;  %v935_v53 = vadd.f32 %v934_v51, %v2700_v54  ;;  %v1038_v60 = vmax.f32 %v770_v44, 0.0  ;;  %v1040_v61 = vmax.f32 %v931_v45, 0.0 }
 0x268   :  { %v1041_v58 = vmax.f32 %v772_v48, 0.0  ;;  %v1043_v59 = vmax.f32 %v933_v49, 0.0 }
 0x269   :  { %v1042_v62 = vmax.f32 %v774_v52, 0.0  ;;  %v1044_v63 = vmax.f32 %v935_v53, 0.0 }
 0x26a   :  { %v1101_v0 = vpack.c.bf16 %v1041_v58, %v1037_v55  ;;  %v1103_v2 = vpack.c.bf16 %v1043_v59, %v1039_v56 }
 0x26b   :  { %v1102_v3 = vpack.c.bf16 %v1042_v62, %v1038_v60  ;;  %v1104_v4 = vpack.c.bf16 %v1044_v63, %v1040_v61  ;;  %v777_v5 = vpop.f32.mrb[64].mxu1  ;;  %v938_v6 = vpop.f32.mrb[68].mxu0 }
 0x26c   :  { %v778_v7 = vadd.f32 %v777_v5, %v2694_v22  ;;  %v939_v8 = vadd.f32 %v938_v6, %v2696_v23  ;;  %v779_v9 = vpop.f32.mrb[65].mxu1  ;;  %v940_v10 = vpop.f32.mrb[69].mxu0 }
 0x26d   :  { %v780_v12 = vadd.f32 %v779_v9, %v2698_v24  ;;  %v941_v13 = vadd.f32 %v940_v10, %v2700_v54  ;;  %v781_v14 = vpop.f32.mrb[66].mxu1  ;;  %v942_v15 = vpop.f32.mrb[70].mxu0  ;;  %1484 = vmatprep.mubr.bf16.mxu1 %v1102_v3  ;;  %1620 = vmatprep.mubr.bf16.mxu0 %v1104_v4 }
 0x26e   :  { %v782_v57 = vadd.f32 %v781_v14, %v2694_v22  ;;  %v943_v11 = vadd.f32 %v942_v15, %v2696_v23  ;;  %v783_v37 = vpop.f32.mrb[67].mxu1  ;;  %v944_v1 = vpop.f32.mrb[71].mxu0  ;;  %1485 = vmatmul.mubr.bf16.gmra.mrb[112].mxu1 %v1101_v0  ;;  %1621 = vmatmul.mubr.bf16.gmra.mrb[116].mxu0 %v1103_v2  ;;  %v1045_v18 = vmax.f32 %v778_v7, 0.0  ;;  %v1047_v19 = vmax.f32 %v939_v8, 0.0 }
 0x26f   :  { %v784_v16 = vadd.f32 %v783_v37, %v2698_v24  ;;  %v945_v17 = vadd.f32 %v944_v1, %v2700_v54  ;;  %v1046_v25 = vmax.f32 %v780_v12, 0.0  ;;  %v1048_v26 = vmax.f32 %v941_v13, 0.0 }
 0x270   :  { %v1049_v20 = vmax.f32 %v782_v57, 0.0  ;;  %v1051_v21 = vmax.f32 %v943_v11, 0.0 }
 0x271   :  { %v1050_v27 = vmax.f32 %v784_v16, 0.0  ;;  %v1052_v28 = vmax.f32 %v945_v17, 0.0  ;;  %v2805_v16 = vld [vmem:[%s2850_s6] ss:$0 sm:$0xff]  ;;  %s2470_s6 = smov [#allocation10]  }
 0x272   :  { %v1105_v29 = vpack.c.bf16 %v1049_v20, %v1045_v18  ;;  %v1107_v30 = vpack.c.bf16 %v1051_v21, %v1047_v19  ;;  %s1782_s30 = sshll.u32 %s2470_s6, 4  ;;  %s1783_s30 = int_to_ptr.vmem [resolvable:$true] %s1782_s30 }
 0x273   :  { %v1106_v31 = vpack.c.bf16 %v1050_v27, %v1046_v25  ;;  %v1108_v32 = vpack.c.bf16 %v1052_v28, %v1048_v26  ;;  %v787_v33 = vpop.f32.mrb[68].mxu1  ;;  %v948_v34 = vpop.f32.mrb[72].mxu0  ;;  %s2429_s8 = scalar_lea.vmem %s1783_s30, 3200  ;;  %p2434_p5 = scmp.lt.s32.totalorder %s1783_s30, %s1783_s30 }
 0x274   :  { %v788_v35 = vadd.f32 %v787_v33, %v2694_v22  ;;  %v949_v36 = vadd.f32 %v948_v34, %v2696_v23  ;;  %v789_v38 = vpop.f32.mrb[69].mxu1  ;;  %v950_v39 = vpop.f32.mrb[73].mxu0  ;;  %p2430_p4 = scmp.ne.s32.totalorder %s1783_s30, %s2429_s8  ;;  %p2435_p6 = scmp.lt.s32.totalorder %s2429_s8, %s2429_s8 }
 0x275   :  { %v790_v40 = vadd.f32 %v789_v38, %v2698_v24  ;;  %v951_v41 = vadd.f32 %v950_v39, %v2700_v54  ;;  %v791_v42 = vpop.f32.mrb[70].mxu1  ;;  %v952_v43 = vpop.f32.mrb[74].mxu0  ;;  %1492 = vmatprep.mubr.bf16.mxu1 %v1106_v31  ;;  %1628 = vmatprep.mubr.bf16.mxu0 %v1108_v32 }
 0x276   :  { %v792_v44 = vadd.f32 %v791_v42, %v2694_v22  ;;  %v953_v45 = vadd.f32 %v952_v43, %v2696_v23  ;;  %v793_v46 = vpop.f32.mrb[71].mxu1  ;;  %v954_v47 = vpop.f32.mrb[75].mxu0  ;;  %1493 = vmatmul.mubr.bf16.gmra.mrb[116].mxu1 %v1105_v29  ;;  %1629 = vmatmul.mubr.bf16.gmra.mrb[120].mxu0 %v1107_v30  ;;  %v1053_v50 = vmax.f32 %v788_v35, 0.0  ;;  %v1055_v51 = vmax.f32 %v949_v36, 0.0  ;;  %p2436_p7 = por %p2435_p6, %p2434_p5 }
 0x277   :  { %v794_v48 = vadd.f32 %v793_v46, %v2698_v24  ;;  %v955_v49 = vadd.f32 %v954_v47, %v2700_v54  ;;  %v1054_v55 = vmax.f32 %v790_v40, 0.0  ;;  %v1056_v56 = vmax.f32 %v951_v41, 0.0 }
 0x278   :  { %v1057_v52 = vmax.f32 %v792_v44, 0.0  ;;  %v1059_v53 = vmax.f32 %v953_v45, 0.0  ;;  %p2437_p8 = pnand %p2436_p7, %p2430_p4 }
 0x279   :  { %v1058_v58 = vmax.f32 %v794_v48, 0.0  ;;  %v1060_v59 = vmax.f32 %v955_v49, 0.0 }
 0x27a   :  { %v1109_v60 = vpack.c.bf16 %v1057_v52, %v1053_v50  ;;  %v1111_v61 = vpack.c.bf16 %v1059_v53, %v1055_v51 }
 0x27b   :  { %v1110_v62 = vpack.c.bf16 %v1058_v58, %v1054_v55  ;;  %v1112_v63 = vpack.c.bf16 %v1060_v59, %v1056_v56  ;;  %v797_v0 = vpop.f32.mrb[72].mxu1  ;;  %v958_v2 = vpop.f32.mrb[76].mxu0 }
 0x27c   :  { %v798_v3 = vadd.f32 %v797_v0, %v2694_v22  ;;  %v959_v4 = vadd.f32 %v958_v2, %v2696_v23  ;;  %v799_v5 = vpop.f32.mrb[73].mxu1  ;;  %v960_v6 = vpop.f32.mrb[77].mxu0 }
 0x27d   :  { %v800_v7 = vadd.f32 %v799_v5, %v2698_v24  ;;  %v961_v8 = vadd.f32 %v960_v6, %v2700_v54  ;;  %v801_v9 = vpop.f32.mrb[74].mxu1  ;;  %v962_v10 = vpop.f32.mrb[78].mxu0  ;;  %1500 = vmatprep.mubr.bf16.mxu1 %v1110_v62  ;;  %1636 = vmatprep.mubr.bf16.mxu0 %v1112_v63 }
 0x27e   :  { %v802_v12 = vpop.f32.mrb[75].mxu1  ;;  %v963_v13 = vpop.f32.mrb[79].mxu0  ;;  %1501 = vmatmul.mubr.bf16.gmra.mrb[120].mxu1 %v1109_v60  ;;  %1637 = vmatmul.mubr.bf16.gmra.mrb[124].mxu0 %v1111_v61  ;;  %v1061_v57 = vmax.f32 %v798_v3, 0.0  ;;  %v1063_v22 = vmax.f32 %v959_v4, 0.0 }
 0x27f   :  { %v1062_v14 = vmax.f32 %v800_v7, 0.0  ;;  %v1064_v15 = vmax.f32 %v961_v8, 0.0 }
 0x280   :  { %v1113_v37 = vpack.c.bf16 %v1061_v57, %v1061_v57  ;;  %v1115_v24 = vpack.c.bf16 %v1063_v22, %v1063_v22 }
 0x281   :  { %v1114_v11 = vpack.c.bf16 %v1062_v14, %v1062_v14  ;;  %v1116_v23 = vpack.c.bf16 %v1064_v15, %v1064_v15 }
 0x283   :  { %1508 = vmatprep.mubr.bf16.mxu1 %v1114_v11  ;;  %1644 = vmatprep.mubr.bf16.mxu0 %v1116_v23 }
 0x286   :  { %1509 = vmatmul.mubr.bf16.gmra.mrb[124].mxu1 %v1113_v37  ;;  %1645 = vmatmul.mubr.bf16.gmra.mrb[128].mxu0 %v1115_v24 }
 0x2f9   :  { %v1920_v54 = vpop.f32.mrb[76].mxu1  ;;  %v2014_v1 = vpop.f32.mrb[80].mxu0 }
 0x2fa   :  { %v1921_v17 = vpop.f32.mrb[77].mxu1  ;;  %v2015_v18 = vpop.f32.mrb[81].mxu0 }
 0x2fb   :  { %v1922_v19 = vadd.f32 %v1921_v17, %v1920_v54  ;;  %v2016_v20 = vadd.f32 %v2015_v18, %v2014_v1  ;;  %v1923_v21 = vpop.f32.mrb[78].mxu1  ;;  %v2017_v25 = vpop.f32.mrb[82].mxu0 }
 0x2fc   :  { %v1924_v26 = vpop.f32.mrb[79].mxu1  ;;  %v2018_v27 = vpop.f32.mrb[83].mxu0 }
 0x2fd   :  { %v1415_v28 = vadd.f32 %v1922_v19, %v2805_v16  ;;  %v1925_v29 = vadd.f32 %v1924_v26, %v1923_v21  ;;  %v2019_v30 = vadd.f32 %v2018_v27, %v2017_v25 }
 0x2ff   :  { %v1551_v31 = vadd.f32 %v2016_v20, %v1415_v28  ;;  %v1418_v32 = vadd.f32 %v1925_v29, %v2805_v16 }
 0x301   :  { %v1652_v33 = vmul.f32 0.5, %v1551_v31  ;;  %v1554_v34 = vadd.f32 %v2019_v30, %v1418_v32  ;;  %v1926_v35 = vpop.f32.mrb[80].mxu1  ;;  %v2020_v36 = vpop.f32.mrb[84].mxu0 }
 0x302   :  { %v1927_v38 = vpop.f32.mrb[81].mxu1  ;;  %v2021_v39 = vpop.f32.mrb[85].mxu0 }
 0x303   :  { %2291 = vtanh.f32 %v1652_v33  ;;  %v1653_v40 = vmul.f32 0.5, %v1554_v34  ;;  %v1928_v41 = vadd.f32 %v1927_v38, %v1926_v35  ;;  %v2022_v42 = vadd.f32 %v2021_v39, %v2020_v36  ;;  %v1929_v43 = vpop.f32.mrb[82].mxu1  ;;  %v2023_v44 = vpop.f32.mrb[86].mxu0 }
 0x304   :  { %v1930_v45 = vpop.f32.mrb[83].mxu1  ;;  %v2024_v46 = vpop.f32.mrb[87].mxu0 }
 0x305   :  { %2293 = vtanh.f32 %v1653_v40  ;;  %v1423_v47 = vadd.f32 %v1928_v41, %v2805_v16  ;;  %v1931_v48 = vadd.f32 %v1930_v45, %v1929_v43  ;;  %v2025_v49 = vadd.f32 %v2024_v46, %v2023_v44 }
 0x307   :  { %v1559_v50 = vadd.f32 %v2022_v42, %v1423_v47  ;;  %v1426_v51 = vadd.f32 %v1931_v48, %v2805_v16 }
 0x309   :  { %v1654_v52 = vmul.f32 0.5, %v1559_v50  ;;  %v1562_v53 = vadd.f32 %v2025_v49, %v1426_v51  ;;  %v1932_v55 = vpop.f32.mrb[84].mxu1  ;;  %v2026_v56 = vpop.f32.mrb[88].mxu0 }
 0x30a   :  { %v1933_v58 = vpop.f32.mrb[85].mxu1  ;;  %v2027_v59 = vpop.f32.mrb[89].mxu0 }
 0x30b   :  { %2295 = vtanh.f32 %v1654_v52  ;;  %v1655_v60 = vmul.f32 0.5, %v1562_v53  ;;  %v1934_v61 = vadd.f32 %v1933_v58, %v1932_v55  ;;  %v2028_v62 = vadd.f32 %v2027_v59, %v2026_v56  ;;  %v1935_v63 = vpop.f32.mrb[86].mxu1  ;;  %v2029_v0 = vpop.f32.mrb[90].mxu0 }
 0x30c   :  { %v1936_v2 = vpop.f32.mrb[87].mxu1  ;;  %v2030_v3 = vpop.f32.mrb[91].mxu0 }
 0x30d   :  { %v2292_v4 = vpop.eup %2291  ;;  %2297 = vtanh.f32 %v1655_v60  ;;  %v1431_v5 = vadd.f32 %v1934_v61, %v2805_v16  ;;  %v1937_v6 = vadd.f32 %v1936_v2, %v1935_v63  ;;  %v2031_v7 = vadd.f32 %v2030_v3, %v2029_v0 }
 0x30e   :  { %v1702_v8 = vmul.f32 0.5, %v2292_v4 }
 0x30f   :  { %v2294_v9 = vpop.eup %2293  ;;  %v1567_v10 = vadd.f32 %v2028_v62, %v1431_v5  ;;  %v1434_v12 = vadd.f32 %v1937_v6, %v2805_v16 }
 0x310   :  { %v1727_v13 = vadd.f32 0.5, %v1702_v8  ;;  %v1703_v14 = vmul.f32 0.5, %v2294_v9 }
 0x311   :  { %v1656_v15 = vmul.f32 0.5, %v1567_v10  ;;  %v1570_v57 = vadd.f32 %v2031_v7, %v1434_v12  ;;  %v1938_v22 = vpop.f32.mrb[88].mxu1  ;;  %v2032_v11 = vpop.f32.mrb[92].mxu0 }
 0x312   :  { %1752 = vst [vmem:[#allocation10] sm:$0xff] %v1727_v13  ;;  %v1728_v23 = vadd.f32 0.5, %v1703_v14  ;;  %v1939_v37 = vpop.f32.mrb[89].mxu1  ;;  %v2033_v24 = vpop.f32.mrb[93].mxu0 }
 0x313   :  { %2299 = vtanh.f32 %v1656_v15  ;;  %v1657_v54 = vmul.f32 0.5, %v1570_v57  ;;  %v1940_v1 = vadd.f32 %v1939_v37, %v1938_v22  ;;  %v2034_v17 = vadd.f32 %v2033_v24, %v2032_v11  ;;  %v1941_v18 = vpop.f32.mrb[90].mxu1  ;;  %v2035_v19 = vpop.f32.mrb[94].mxu0 }
 0x314   :  { %1753 = vst [vmem:[#allocation10 + $0x8] sm:$0xff] %v1728_v23  ;;  %v1942_v20 = vpop.f32.mrb[91].mxu1  ;;  %v2036_v21 = vpop.f32.mrb[95].mxu0 }
 0x315   :  { %v2296_v25 = vpop.eup %2295  ;;  %2301 = vtanh.f32 %v1657_v54  ;;  %v1439_v26 = vadd.f32 %v1940_v1, %v2805_v16  ;;  %v1943_v27 = vadd.f32 %v1942_v20, %v1941_v18  ;;  %v2037_v28 = vadd.f32 %v2036_v21, %v2035_v19 }
 0x316   :  { %v1704_v29 = vmul.f32 0.5, %v2296_v25 }
 0x317   :  { %v2298_v30 = vpop.eup %2297  ;;  %v1575_v31 = vadd.f32 %v2034_v17, %v1439_v26  ;;  %v1442_v32 = vadd.f32 %v1943_v27, %v2805_v16 }
 0x318   :  { %v1729_v33 = vadd.f32 0.5, %v1704_v29  ;;  %v1705_v34 = vmul.f32 0.5, %v2298_v30 }
 0x319   :  { %v1658_v35 = vmul.f32 0.5, %v1575_v31  ;;  %v1578_v36 = vadd.f32 %v2037_v28, %v1442_v32  ;;  %v1944_v38 = vpop.f32.mrb[92].mxu1  ;;  %v2038_v39 = vpop.f32.mrb[96].mxu0 }
 0x31a   :  { %1754 = vst [vmem:[#allocation10 + $0x10] sm:$0xff] %v1729_v33  ;;  %v1730_v40 = vadd.f32 0.5, %v1705_v34  ;;  %v1945_v41 = vpop.f32.mrb[93].mxu1  ;;  %v2039_v42 = vpop.f32.mrb[97].mxu0 }
 0x31b   :  { %2303 = vtanh.f32 %v1658_v35  ;;  %v1659_v43 = vmul.f32 0.5, %v1578_v36  ;;  %v1946_v44 = vadd.f32 %v1945_v41, %v1944_v38  ;;  %v2040_v45 = vadd.f32 %v2039_v42, %v2038_v39  ;;  %v1947_v46 = vpop.f32.mrb[94].mxu1  ;;  %v2041_v47 = vpop.f32.mrb[98].mxu0 }
 0x31c   :  { %1755 = vst [vmem:[#allocation10 + $0x18] sm:$0xff] %v1730_v40  ;;  %v1948_v48 = vpop.f32.mrb[95].mxu1  ;;  %v2042_v49 = vpop.f32.mrb[99].mxu0 }
 0x31d   :  { %v2300_v50 = vpop.eup %2299  ;;  %2305 = vtanh.f32 %v1659_v43  ;;  %v1447_v51 = vadd.f32 %v1946_v44, %v2805_v16  ;;  %v1949_v52 = vadd.f32 %v1948_v48, %v1947_v46  ;;  %v2043_v53 = vadd.f32 %v2042_v49, %v2041_v47 }
 0x31e   :  { %v1706_v55 = vmul.f32 0.5, %v2300_v50 }
 0x31f   :  { %v2302_v56 = vpop.eup %2301  ;;  %v1583_v58 = vadd.f32 %v2040_v45, %v1447_v51  ;;  %v1450_v59 = vadd.f32 %v1949_v52, %v2805_v16 }
 0x320   :  { %v1731_v60 = vadd.f32 0.5, %v1706_v55  ;;  %v1707_v61 = vmul.f32 0.5, %v2302_v56 }
 0x321   :  { %v1660_v62 = vmul.f32 0.5, %v1583_v58  ;;  %v1586_v63 = vadd.f32 %v2043_v53, %v1450_v59  ;;  %v1950_v0 = vpop.f32.mrb[96].mxu1  ;;  %v2044_v2 = vpop.f32.mrb[100].mxu0 }
 0x322   :  { %1756 = vst [vmem:[#allocation10 + $0x20] sm:$0xff] %v1731_v60  ;;  %v1732_v3 = vadd.f32 0.5, %v1707_v61  ;;  %v1951_v4 = vpop.f32.mrb[97].mxu1  ;;  %v2045_v5 = vpop.f32.mrb[101].mxu0 }
 0x323   :  { %2307 = vtanh.f32 %v1660_v62  ;;  %v1661_v6 = vmul.f32 0.5, %v1586_v63  ;;  %v1952_v7 = vadd.f32 %v1951_v4, %v1950_v0  ;;  %v2046_v8 = vadd.f32 %v2045_v5, %v2044_v2  ;;  %v1953_v9 = vpop.f32.mrb[98].mxu1  ;;  %v2047_v10 = vpop.f32.mrb[102].mxu0 }
 0x324   :  { %1757 = vst [vmem:[#allocation10 + $0x28] sm:$0xff] %v1732_v3  ;;  %v1954_v12 = vpop.f32.mrb[99].mxu1  ;;  %v2048_v13 = vpop.f32.mrb[103].mxu0 }
 0x325   :  { %v2304_v14 = vpop.eup %2303  ;;  %2309 = vtanh.f32 %v1661_v6  ;;  %v1455_v15 = vadd.f32 %v1952_v7, %v2805_v16  ;;  %v1955_v57 = vadd.f32 %v1954_v12, %v1953_v9  ;;  %v2049_v22 = vadd.f32 %v2048_v13, %v2047_v10 }
 0x326   :  { %v1708_v11 = vmul.f32 0.5, %v2304_v14 }
 0x327   :  { %v2306_v23 = vpop.eup %2305  ;;  %v1591_v37 = vadd.f32 %v2046_v8, %v1455_v15  ;;  %v1458_v24 = vadd.f32 %v1955_v57, %v2805_v16 }
 0x328   :  { %v1733_v54 = vadd.f32 0.5, %v1708_v11  ;;  %v1709_v1 = vmul.f32 0.5, %v2306_v23 }
 0x329   :  { %v1662_v17 = vmul.f32 0.5, %v1591_v37  ;;  %v1594_v18 = vadd.f32 %v2049_v22, %v1458_v24  ;;  %v1956_v19 = vpop.f32.mrb[100].mxu1  ;;  %v2050_v20 = vpop.f32.mrb[104].mxu0 }
 0x32a   :  { %1758 = vst [vmem:[#allocation10 + $0x30] sm:$0xff] %v1733_v54  ;;  %v1734_v21 = vadd.f32 0.5, %v1709_v1  ;;  %v1957_v25 = vpop.f32.mrb[101].mxu1  ;;  %v2051_v26 = vpop.f32.mrb[105].mxu0 }
 0x32b   :  { %2311 = vtanh.f32 %v1662_v17  ;;  %v1663_v27 = vmul.f32 0.5, %v1594_v18  ;;  %v1958_v28 = vadd.f32 %v1957_v25, %v1956_v19  ;;  %v2052_v29 = vadd.f32 %v2051_v26, %v2050_v20  ;;  %v1959_v30 = vpop.f32.mrb[102].mxu1  ;;  %v2053_v31 = vpop.f32.mrb[106].mxu0 }
 0x32c   :  { %1759 = vst [vmem:[#allocation10 + $0x38] sm:$0xff] %v1734_v21  ;;  %v1960_v32 = vpop.f32.mrb[103].mxu1  ;;  %v2054_v33 = vpop.f32.mrb[107].mxu0 }
 0x32d   :  { %v2308_v34 = vpop.eup %2307  ;;  %2313 = vtanh.f32 %v1663_v27  ;;  %v1463_v35 = vadd.f32 %v1958_v28, %v2805_v16  ;;  %v1961_v36 = vadd.f32 %v1960_v32, %v1959_v30  ;;  %v2055_v38 = vadd.f32 %v2054_v33, %v2053_v31 }
 0x32e   :  { %v1710_v39 = vmul.f32 0.5, %v2308_v34 }
 0x32f   :  { %v2310_v40 = vpop.eup %2309  ;;  %v1599_v41 = vadd.f32 %v2052_v29, %v1463_v35  ;;  %v1466_v42 = vadd.f32 %v1961_v36, %v2805_v16 }
 0x330   :  { %v1735_v43 = vadd.f32 0.5, %v1710_v39  ;;  %v1711_v44 = vmul.f32 0.5, %v2310_v40 }
 0x331   :  { %v1664_v45 = vmul.f32 0.5, %v1599_v41  ;;  %v1602_v46 = vadd.f32 %v2055_v38, %v1466_v42  ;;  %v1962_v47 = vpop.f32.mrb[104].mxu1  ;;  %v2056_v48 = vpop.f32.mrb[108].mxu0 }
 0x332   :  { %1760 = vst [vmem:[#allocation10 + $0x40] sm:$0xff] %v1735_v43  ;;  %v1736_v49 = vadd.f32 0.5, %v1711_v44  ;;  %v1963_v50 = vpop.f32.mrb[105].mxu1  ;;  %v2057_v51 = vpop.f32.mrb[109].mxu0 }
 0x333   :  { %2315 = vtanh.f32 %v1664_v45  ;;  %v1665_v52 = vmul.f32 0.5, %v1602_v46  ;;  %v1964_v53 = vadd.f32 %v1963_v50, %v1962_v47  ;;  %v2058_v55 = vadd.f32 %v2057_v51, %v2056_v48  ;;  %v1965_v56 = vpop.f32.mrb[106].mxu1  ;;  %v2059_v58 = vpop.f32.mrb[110].mxu0 }
 0x334   :  { %1761 = vst [vmem:[#allocation10 + $0x48] sm:$0xff] %v1736_v49  ;;  %v1966_v59 = vpop.f32.mrb[107].mxu1  ;;  %v2060_v60 = vpop.f32.mrb[111].mxu0 }
 0x335   :  { %v2312_v61 = vpop.eup %2311  ;;  %2317 = vtanh.f32 %v1665_v52  ;;  %v1471_v62 = vadd.f32 %v1964_v53, %v2805_v16  ;;  %v1967_v63 = vadd.f32 %v1966_v59, %v1965_v56  ;;  %v2061_v0 = vadd.f32 %v2060_v60, %v2059_v58 }
 0x336   :  { %v1712_v2 = vmul.f32 0.5, %v2312_v61 }
 0x337   :  { %v2314_v3 = vpop.eup %2313  ;;  %v1607_v4 = vadd.f32 %v2058_v55, %v1471_v62  ;;  %v1474_v5 = vadd.f32 %v1967_v63, %v2805_v16 }
 0x338   :  { %v1737_v6 = vadd.f32 0.5, %v1712_v2  ;;  %v1713_v7 = vmul.f32 0.5, %v2314_v3 }
 0x339   :  { %v1666_v8 = vmul.f32 0.5, %v1607_v4  ;;  %v1610_v9 = vadd.f32 %v2061_v0, %v1474_v5  ;;  %v1968_v10 = vpop.f32.mrb[108].mxu1  ;;  %v2062_v12 = vpop.f32.mrb[112].mxu0 }
 0x33a   :  { %1762 = vst [vmem:[#allocation10 + $0x50] sm:$0xff] %v1737_v6  ;;  %v1738_v13 = vadd.f32 0.5, %v1713_v7  ;;  %v1969_v14 = vpop.f32.mrb[109].mxu1  ;;  %v2063_v15 = vpop.f32.mrb[113].mxu0 }
 0x33b   :  { %2319 = vtanh.f32 %v1666_v8  ;;  %v1667_v57 = vmul.f32 0.5, %v1610_v9  ;;  %v1970_v22 = vadd.f32 %v1969_v14, %v1968_v10  ;;  %v2064_v11 = vadd.f32 %v2063_v15, %v2062_v12  ;;  %v1971_v23 = vpop.f32.mrb[110].mxu1  ;;  %v2065_v37 = vpop.f32.mrb[114].mxu0 }
 0x33c   :  { %1763 = vst [vmem:[#allocation10 + $0x58] sm:$0xff] %v1738_v13  ;;  %v1972_v24 = vpop.f32.mrb[111].mxu1  ;;  %v2066_v54 = vpop.f32.mrb[115].mxu0 }
 0x33d   :  { %v2316_v1 = vpop.eup %2315  ;;  %2321 = vtanh.f32 %v1667_v57  ;;  %v1479_v17 = vadd.f32 %v1970_v22, %v2805_v16  ;;  %v1973_v18 = vadd.f32 %v1972_v24, %v1971_v23  ;;  %v2067_v19 = vadd.f32 %v2066_v54, %v2065_v37 }
 0x33e   :  { %v1714_v20 = vmul.f32 0.5, %v2316_v1 }
 0x33f   :  { %v2318_v21 = vpop.eup %2317  ;;  %v1615_v25 = vadd.f32 %v2064_v11, %v1479_v17  ;;  %v1482_v26 = vadd.f32 %v1973_v18, %v2805_v16 }
 0x340   :  { %v1739_v27 = vadd.f32 0.5, %v1714_v20  ;;  %v1715_v28 = vmul.f32 0.5, %v2318_v21 }
 0x341   :  { %v1668_v29 = vmul.f32 0.5, %v1615_v25  ;;  %v1618_v30 = vadd.f32 %v2067_v19, %v1482_v26  ;;  %v1974_v31 = vpop.f32.mrb[112].mxu1  ;;  %v2068_v32 = vpop.f32.mrb[116].mxu0 }
 0x342   :  { %1764 = vst [vmem:[#allocation10 + $0x60] sm:$0xff] %v1739_v27  ;;  %v1740_v33 = vadd.f32 0.5, %v1715_v28  ;;  %v1975_v34 = vpop.f32.mrb[113].mxu1  ;;  %v2069_v35 = vpop.f32.mrb[117].mxu0 }
 0x343   :  { %2323 = vtanh.f32 %v1668_v29  ;;  %v1669_v36 = vmul.f32 0.5, %v1618_v30  ;;  %v1976_v38 = vadd.f32 %v1975_v34, %v1974_v31  ;;  %v2070_v39 = vadd.f32 %v2069_v35, %v2068_v32  ;;  %v1977_v40 = vpop.f32.mrb[114].mxu1  ;;  %v2071_v41 = vpop.f32.mrb[118].mxu0 }
 0x344   :  { %1765 = vst [vmem:[#allocation10 + $0x68] sm:$0xff] %v1740_v33  ;;  %v1978_v42 = vpop.f32.mrb[115].mxu1  ;;  %v2072_v43 = vpop.f32.mrb[119].mxu0 }
 0x345   :  { %v2320_v44 = vpop.eup %2319  ;;  %2325 = vtanh.f32 %v1669_v36  ;;  %v1487_v45 = vadd.f32 %v1976_v38, %v2805_v16  ;;  %v1979_v46 = vadd.f32 %v1978_v42, %v1977_v40  ;;  %v2073_v47 = vadd.f32 %v2072_v43, %v2071_v41 }
 0x346   :  { %v1716_v48 = vmul.f32 0.5, %v2320_v44 }
 0x347   :  { %v2322_v49 = vpop.eup %2321  ;;  %v1623_v50 = vadd.f32 %v2070_v39, %v1487_v45  ;;  %v1490_v51 = vadd.f32 %v1979_v46, %v2805_v16 }
 0x348   :  { %v1741_v52 = vadd.f32 0.5, %v1716_v48  ;;  %v1717_v53 = vmul.f32 0.5, %v2322_v49 }
 0x349   :  { %v1670_v55 = vmul.f32 0.5, %v1623_v50  ;;  %v1626_v56 = vadd.f32 %v2073_v47, %v1490_v51  ;;  %v1980_v58 = vpop.f32.mrb[116].mxu1  ;;  %v2074_v59 = vpop.f32.mrb[120].mxu0 }
 0x34a   :  { %1766 = vst [vmem:[#allocation10 + $0x70] sm:$0xff] %v1741_v52  ;;  %v1742_v60 = vadd.f32 0.5, %v1717_v53  ;;  %v1981_v61 = vpop.f32.mrb[117].mxu1  ;;  %v2075_v62 = vpop.f32.mrb[121].mxu0 }
 0x34b   :  { %2327 = vtanh.f32 %v1670_v55  ;;  %v1671_v63 = vmul.f32 0.5, %v1626_v56  ;;  %v1982_v0 = vadd.f32 %v1981_v61, %v1980_v58  ;;  %v2076_v2 = vadd.f32 %v2075_v62, %v2074_v59  ;;  %v1983_v3 = vpop.f32.mrb[118].mxu1  ;;  %v2077_v4 = vpop.f32.mrb[122].mxu0 }
 0x34c   :  { %1767 = vst [vmem:[#allocation10 + $0x78] sm:$0xff] %v1742_v60  ;;  %v1984_v5 = vpop.f32.mrb[119].mxu1  ;;  %v2078_v6 = vpop.f32.mrb[123].mxu0 }
 0x34d   :  { %v2324_v7 = vpop.eup %2323  ;;  %2329 = vtanh.f32 %v1671_v63  ;;  %v1495_v8 = vadd.f32 %v1982_v0, %v2805_v16  ;;  %v1985_v9 = vadd.f32 %v1984_v5, %v1983_v3  ;;  %v2079_v10 = vadd.f32 %v2078_v6, %v2077_v4 }
 0x34e   :  { %v1718_v12 = vmul.f32 0.5, %v2324_v7 }
 0x34f   :  { %v2326_v13 = vpop.eup %2325  ;;  %v1631_v14 = vadd.f32 %v2076_v2, %v1495_v8  ;;  %v1498_v15 = vadd.f32 %v1985_v9, %v2805_v16 }
 0x350   :  { %v1743_v57 = vadd.f32 0.5, %v1718_v12  ;;  %v1719_v22 = vmul.f32 0.5, %v2326_v13 }
 0x351   :  { %v1672_v11 = vmul.f32 0.5, %v1631_v14  ;;  %v1634_v23 = vadd.f32 %v2079_v10, %v1498_v15  ;;  %v1986_v37 = vpop.f32.mrb[120].mxu1  ;;  %v2080_v24 = vpop.f32.mrb[124].mxu0 }
 0x352   :  { %1768 = vst [vmem:[#allocation10 + $0x80] sm:$0xff] %v1743_v57  ;;  %v1744_v54 = vadd.f32 0.5, %v1719_v22  ;;  %v1987_v1 = vpop.f32.mrb[121].mxu1  ;;  %v2081_v17 = vpop.f32.mrb[125].mxu0 }
 0x353   :  { %2331 = vtanh.f32 %v1672_v11  ;;  %v1673_v18 = vmul.f32 0.5, %v1634_v23  ;;  %v1988_v19 = vadd.f32 %v1987_v1, %v1986_v37  ;;  %v2082_v20 = vadd.f32 %v2081_v17, %v2080_v24  ;;  %v1989_v21 = vpop.f32.mrb[122].mxu1  ;;  %v2083_v25 = vpop.f32.mrb[126].mxu0 }
 0x354   :  { %1769 = vst [vmem:[#allocation10 + $0x88] sm:$0xff] %v1744_v54  ;;  %v1990_v26 = vpop.f32.mrb[123].mxu1  ;;  %v2084_v27 = vpop.f32.mrb[127].mxu0 }
 0x355   :  { %v2328_v28 = vpop.eup %2327  ;;  %2333 = vtanh.f32 %v1673_v18  ;;  %v1503_v29 = vadd.f32 %v1988_v19, %v2805_v16  ;;  %v1991_v30 = vadd.f32 %v1990_v26, %v1989_v21  ;;  %v2085_v31 = vadd.f32 %v2084_v27, %v2083_v25 }
 0x356   :  { %v1720_v32 = vmul.f32 0.5, %v2328_v28 }
 0x357   :  { %v2330_v33 = vpop.eup %2329  ;;  %v1639_v34 = vadd.f32 %v2082_v20, %v1503_v29  ;;  %v1506_v35 = vadd.f32 %v1991_v30, %v2805_v16 }
 0x358   :  { %v1745_v36 = vadd.f32 0.5, %v1720_v32  ;;  %v1721_v38 = vmul.f32 0.5, %v2330_v33 }
 0x359   :  { %v1674_v39 = vmul.f32 0.5, %v1639_v34  ;;  %v1642_v40 = vadd.f32 %v2085_v31, %v1506_v35  ;;  %v1992_v41 = vpop.f32.mrb[124].mxu1  ;;  %v2086_v42 = vpop.f32.mrb[128].mxu0 }
 0x35a   :  { %1770 = vst [vmem:[#allocation10 + $0x90] sm:$0xff] %v1745_v36  ;;  %v1746_v43 = vadd.f32 0.5, %v1721_v38  ;;  %v1993_v44 = vpop.f32.mrb[125].mxu1  ;;  %v2087_v45 = vpop.f32.mrb[129].mxu0 }
 0x35b   :  { %2335 = vtanh.f32 %v1674_v39  ;;  %v1675_v46 = vmul.f32 0.5, %v1642_v40  ;;  %v1994_v47 = vadd.f32 %v1993_v44, %v1992_v41  ;;  %v2088_v48 = vadd.f32 %v2087_v45, %v2086_v42  ;;  %v1995_v49 = vpop.f32.mrb[126].mxu1  ;;  %v2089_v50 = vpop.f32.mrb[130].mxu0 }
 0x35c   :  { %1771 = vst [vmem:[#allocation10 + $0x98] sm:$0xff] %v1746_v43  ;;  %v1996_v51 = vpop.f32.mrb[127].mxu1  ;;  %v2090_v52 = vpop.f32.mrb[131].mxu0 }
 0x35d   :  { %v2332_v53 = vpop.eup %2331  ;;  %2337 = vtanh.f32 %v1675_v46  ;;  %v1511_v55 = vadd.f32 %v1994_v47, %v2805_v16 }
 0x35e   :  { %v1722_v56 = vmul.f32 0.5, %v2332_v53 }
 0x35f   :  { %v2334_v58 = vpop.eup %2333  ;;  %v1647_v59 = vadd.f32 %v2088_v48, %v1511_v55 }
 0x360   :  { %v1747_v60 = vadd.f32 0.5, %v1722_v56  ;;  %v1723_v61 = vmul.f32 0.5, %v2334_v58 }
 0x361   :  { %v1676_v62 = vmul.f32 0.5, %v1647_v59 }
 0x362   :  { %1772 = vst [vmem:[#allocation10 + $0xa0] sm:$0xff] %v1747_v60  ;;  %v1748_v63 = vadd.f32 0.5, %v1723_v61 }
 0x363   :  { %2339 = vtanh.f32 %v1676_v62 }
 0x364   :  { %1773 = vst [vmem:[#allocation10 + $0xa8] sm:$0xff] %v1748_v63 }
 0x365   :  { %v2336_v0 = vpop.eup %2335 }
 0x366   :  { %v1724_v2 = vmul.f32 0.5, %v2336_v0 }
 0x367   :  { %v2338_v3 = vpop.eup %2337 }
 0x368   :  { %v1749_v4 = vadd.f32 0.5, %v1724_v2  ;;  %v1725_v5 = vmul.f32 0.5, %v2338_v3 }
 0x36a   :  { %1774 = vst [vmem:[#allocation10 + $0xb0] sm:$0xff] %v1749_v4  ;;  %v1750_v6 = vadd.f32 0.5, %v1725_v5 }
 0x36c   :  { %1775 = vst [vmem:[#allocation10 + $0xb8] sm:$0xff] %v1750_v6 }
 0x36d   :  { %v2340_v16 = vpop.eup %2339 }
 0x36e   :  { %v1726_v7 = vmul.f32 0.5, %v2340_v16 }
 0x370   :  { %v1751_v8 = vadd.f32 0.5, %v1726_v7 }
 0x372   :  { %1776 = vst [vmem:[#allocation10 + $0xc0] sm:$0xff] %v1751_v8 }
 0x373   :  { %2440 = shalt.err (!%p2437_p8)
}
 0x374   :  { %s2441_s11 = scalar_lea.hbm %s2851_s7, 3200 }
 0x375   :  { %p2442_p9 = scmp.ne.s32.totalorder %s2851_s7, %s2441_s11  ;;  %p2445_p10 = scmp.lt.u32.totalorder %s2441_s11, %s2851_s7 }
 0x377   :  { %p2447_p11 = pnand %p2445_p10, %p2442_p9 }
 0x379   :  { %2450 = shalt.err (!%p2447_p11)
}
 0x37a   :  { %s2471_s16 = smov 128   ;;  %s2472_s17 = smov 8  }
 0x37b   :  { %1788 = dma.vmem_to_hbm [thread:$0]  %s1783_s30, 3200, %s2851_s7, [#allocation4], %s2471_s16, %s2471_s16, %s2472_s17  }
 0x37c   :  { %2457 = dma.done.wait [#allocation4], 3200  }
 0x37d   :  { %2458 = vsyncadd [#allocation4], 4294964096 }
 0x37e   :  { %1792 = vsyncpa [#allocation3], 1 }
 0x37f   :  { %1793 = vsyncpa [#allocation6], 1 }
 0x380   :  { %1794 = vsyncpa [#allocation9], 1 }
 0x381   :  { %1795 = vsyncpa [#allocation4], 1 }

</bundles_post_ra>
